<compile_context>
chip_gen: v7x
topology: tpu7x:2x2x1
jax: 0.10.0
libtpu: 0.0.40
codegen_flags: <defaults>
</compile_context>

<pallas_src>
import functools

import jax
import jax.numpy as jnp
from jax.experimental import pallas as pl
from jax.experimental.pallas import tpu as pltpu


# ---------------------------------------------------------------------------
# Shared in-kernel math: context vector -> (gate, offset) such that the whole
# module collapses algebraically to    out = gate * x + offset
#   gate   = sum_i p_i * g_i
#   offset = sum_i p_i * (1 - g_i) * cw_i
# ---------------------------------------------------------------------------
def _gate_offset(ctx, wc, bc, w1c, b1c, w2, b2, wgc, bgc, *,
                 num_categories, c, h2):
    # category_probs = softmax(Linear(C -> K)(ctx))
    logits = jnp.dot(ctx, wc, preferred_element_type=jnp.float32) + bc       # (M, K)
    probs = jax.nn.softmax(logits, axis=-1)                                  # (M, K)

    # One matmul for all K gates, one for all K hidden layers (concatenated
    # weights), instead of 2*K tiny M<=TB matmuls.
    g_all = jax.nn.sigmoid(
        jnp.dot(ctx, wgc, preferred_element_type=jnp.float32) + bgc)         # (M, K*C)
    h_all = jnp.maximum(
        jnp.dot(ctx, w1c, preferred_element_type=jnp.float32) + b1c, 0.0)    # (M, K*H2)

    gate = jnp.zeros(ctx.shape, jnp.float32)
    offset = jnp.zeros(ctx.shape, jnp.float32)
    # TODO(synk): the K second-stage matmuls below could become one batched
    # dot_general over K if Mosaic reshape/transpose cost ever matters here.
    for k in range(num_categories):            # K is small & static -> unrolled
        h_k = h_all[:, k * h2:(k + 1) * h2]
        cw_k = jax.nn.sigmoid(
            jnp.dot(h_k, w2[k], preferred_element_type=jnp.float32) + b2[k])  # (M, C)
        g_k = g_all[:, k * c:(k + 1) * c]
        p_k = probs[:, k:k + 1]
        gate = gate + p_k * g_k
        offset = offset + (p_k * (1.0 - g_k)) * cw_k
    return gate, offset


# ---------------------------------------------------------------------------
# Kernel 1 (primary): whole-sample blocks, everything fused in one pass.
# ---------------------------------------------------------------------------
def _csa_fused_kernel(x_ref, wc_ref, bc_ref, w1c_ref, b1c_ref, w2_ref, b2_ref,
                      wgc_ref, bgc_ref, o_ref, *, inv_hw, num_categories, c,
                      h2, compute_dtype):
    x = x_ref[...]                                              # (TB, C, HW), input dtype
    # f32-accumulated spatial mean WITHOUT materializing an f32 copy of x.
    ctx = jnp.sum(x, axis=-1, dtype=jnp.float32) * inv_hw       # (TB, C)
    gate, offset = _gate_offset(
        ctx, wc_ref[...], bc_ref[...], w1c_ref[...], b1c_ref[...],
        w2_ref[...], b2_ref[...], wgc_ref[...], bgc_ref[...],
        num_categories=num_categories, c=c, h2=h2)
    g = gate.astype(compute_dtype)[:, :, None]
    o = offset.astype(compute_dtype)[:, :, None]
    # fused = sum_i p_i*(g_i*x + (1-g_i)*cw_i) = gate*x + offset
    o_ref[...] = (x.astype(compute_dtype) * g + o).astype(o_ref.dtype)


# ---------------------------------------------------------------------------
# Kernel 2 (fallback): spatially tiled, ctx precomputed (two-pass form for
# samples too big for whole-sample double-buffered blocks, e.g. v7x 64 MiB).
# ---------------------------------------------------------------------------
def _csa_tiled_kernel(ctx_ref, x_ref, wc_ref, bc_ref, w1c_ref, b1c_ref, w2_ref,
                      b2_ref, wgc_ref, bgc_ref, o_ref, *, num_categories, c,
                      h2, compute_dtype):
    ctx = ctx_ref[...][:, 0, :]                                 # (1, C) f32
    gate, offset = _gate_offset(
        ctx, wc_ref[...], bc_ref[...], w1c_ref[...], b1c_ref[...],
        w2_ref[...], b2_ref[...], wgc_ref[...], bgc_ref[...],
        num_categories=num_categories, c=c, h2=h2)
    x = x_ref[...]                                              # (1, C, THW)
    g = gate.astype(compute_dtype)[:, :, None]
    o = offset.astype(compute_dtype)[:, :, None]
    o_ref[...] = (x.astype(compute_dtype) * g + o).astype(o_ref.dtype)


# ---------------------------------------------------------------------------
# Wrapper helpers
# ---------------------------------------------------------------------------
def _vmem_ceiling_bytes():
    try:
        cap = int(pltpu.get_tpu_info().vmem_capacity_bytes)
    except Exception:
        cap = 64 << 20        # conservative default (v7x: 64 MiB per TensorCore)
    # Leave headroom for compiler-internal scratch; never request above 128 MiB.
    return max(16 << 20, min(int(cap * 3 // 4), 128 << 20))


def _elementwise_dtype(x_dtype):
    # Final FMA dtype: input dtype on bf16-capable VPUs (v6e/v7x), f32 for f32
    # inputs and on older chips (v5e and earlier have no bf16 VALUs).
    if jnp.dtype(x_dtype) == jnp.dtype(jnp.float32):
        return jnp.float32
    try:
        kind = jax.devices()[0].device_kind.lower()
    except Exception:
        kind = ""
    if any(tag in kind for tag in ("v2", "v3", "v4", "v5")):
        return jnp.float32
    return jnp.dtype(x_dtype)


def _pick_batch_tile(b, per_sample_bytes, target_bytes=4 << 20):
    tb = 1
    for cand in range(1, b + 1):
        if b % cand == 0 and cand * per_sample_bytes <= target_bytes:
            tb = cand
    return tb


def _const_spec(a, grid_rank, weight_mode):
    zeros = (0,) * a.ndim
    if grid_rank == 1:
        imap = lambda b, _z=zeros: _z
    else:
        imap = lambda b, t, _z=zeros: _z
    if weight_mode is None:
        return pl.BlockSpec(a.shape, imap)
    return pl.BlockSpec(a.shape, imap, pipeline_mode=weight_mode)


def _cost_estimate(B, C, HW, K, H2, itemsize, w_bytes):
    flops = 2 * B * C * HW + 2 * B * (C * K + K * (C * H2 + H2 * C + C * C))
    transcendentals = B * (K + 2 * K * C)
    bytes_accessed = 2 * B * C * HW * itemsize + w_bytes
    return pl.CostEstimate(flops=int(flops),
                           transcendentals=int(transcendentals),
                           bytes_accessed=int(bytes_accessed))


def _run_fused(x3, weights, *, B, C, HW, K, H2, w_bytes, ceiling, cost,
               compute_dtype, per_sample):
    tb = _pick_batch_tile(B, per_sample)
    blk = tb * per_sample
    kernel = functools.partial(_csa_fused_kernel, inv_hw=1.0 / HW,
                               num_categories=K, c=C, h2=H2,
                               compute_dtype=compute_dtype)
    x_spec = pl.BlockSpec((tb, C, HW), lambda b: (b, 0, 0))
    o_spec = pl.BlockSpec((tb, C, HW), lambda b: (b, 0, 0))

    def run(weight_mode):
        w_factor = 1 if weight_mode is not None else 2
        # double-buffered in + out blocks, weights, ~1 block of temporaries.
        need = 4 * blk + w_factor * w_bytes + blk + (4 << 20)
        vmem_limit = int(min(max(need, 32 << 20), ceiling))
        in_specs = [x_spec] + [_const_spec(a, 1, weight_mode) for a in weights]
        out = pl.pallas_call(
            kernel,
            grid=(B // tb,),
            out_shape=jax.ShapeDtypeStruct((B, C, HW), x3.dtype),
            in_specs=in_specs,
            out_specs=o_spec,
            compiler_params=pltpu.CompilerParams(
                dimension_semantics=("parallel",),
                vmem_limit_bytes=vmem_limit),
            cost_estimate=cost,
        )(x3, *weights)
        return jax.block_until_ready(out)

    try:
        return run(pl.Buffered(1))      # weights never change -> single buffer
    except Exception:
        return run(None)                # pipeline_mode unsupported -> default


def _run_two_pass(x3, weights, *, B, C, HW, K, H2, itemsize, w_bytes, ceiling,
                  cost, compute_dtype):
    # Pass 1: tiny per-sample context means (one extra HBM read, done by XLA).
    ctx3 = jnp.mean(x3, axis=-1, dtype=jnp.float32)[:, None, :]   # (B, 1, C)

    # Pass 2: spatially tiled kernel; the (1,C)->(gate,offset) MLP is
    # recomputed per tile (cheap) so the heavy path stays in Pallas.
    target_elems = max(128, (1 << 20) // max(1, C * itemsize))
    thw = min(HW, max(128, (target_elems // 128) * 128))
    if thw >= HW:
        thw = HW
    n_t = pl.cdiv(HW, thw)
    blk = C * thw * itemsize

    kernel = functools.partial(_csa_tiled_kernel, num_categories=K, c=C, h2=H2,
                               compute_dtype=compute_dtype)
    ctx_spec = pl.BlockSpec((1, 1, C), lambda b, t: (b, 0, 0))
    x_spec = pl.BlockSpec((1, C, thw), lambda b, t: (b, 0, t))
    o_spec = pl.BlockSpec((1, C, thw), lambda b, t: (b, 0, t))

    def run(weight_mode):
        w_factor = 1 if weight_mode is not None else 2
        need = 4 * blk + w_factor * w_bytes + blk + (4 << 20)
        vmem_limit = int(min(max(need, 32 << 20), ceiling))
        in_specs = ([ctx_spec, x_spec]
                    + [_const_spec(a, 2, weight_mode) for a in weights])
        out = pl.pallas_call(
            kernel,
            grid=(B, n_t),
            out_shape=jax.ShapeDtypeStruct((B, C, HW), x3.dtype),
            in_specs=in_specs,
            out_specs=o_spec,
            compiler_params=pltpu.CompilerParams(
                dimension_semantics=("parallel", "parallel"),
                vmem_limit_bytes=vmem_limit),
            cost_estimate=cost,
        )(ctx3, x3, *weights)
        return jax.block_until_ready(out)

    try:
        return run(pl.Buffered(1))
    except Exception:
        return run(None)


# ---------------------------------------------------------------------------
# Public wrapper
# ---------------------------------------------------------------------------
def category_specific_adapter(x_nchw, params, *, force_two_pass=False):
    """x_nchw: (B, C, H, W). params: dict of stacked weights (see init_params)."""
    B, C, H, W = x_nchw.shape
    HW = H * W
    x3 = x_nchw.reshape(B, C, HW)            # contiguous merge -> no HBM pass
    dtype = x3.dtype
    itemsize = jnp.dtype(dtype).itemsize

    wc, bc = params["wc"], params["bc"]      # (C, K), (1, K)
    w1, b1 = params["w1"], params["b1"]      # (K, C, H2), (K, 1, H2)
    w2, b2 = params["w2"], params["b2"]      # (K, H2, C), (K, 1, C)
    wg, bg = params["wg"], params["bg"]      # (K, C, C),  (K, 1, C)
    K = w1.shape[0]
    H2 = w1.shape[2]

    # Concatenate per-adapter gate/hidden weights along the output axis so
    # those stages are a single matmul each inside the kernel.
    wgc = jnp.transpose(wg, (1, 0, 2)).reshape(C, K * C)
    bgc = bg.reshape(1, K * C)
    w1c = jnp.transpose(w1, (1, 0, 2)).reshape(C, K * H2)
    b1c = b1.reshape(1, K * H2)

    weights = (wc, bc, w1c, b1c, w2, b2, wgc, bgc)
    w_bytes = sum(int(a.size) * jnp.dtype(a.dtype).itemsize for a in weights)
    compute_dtype = _elementwise_dtype(dtype)
    ceiling = _vmem_ceiling_bytes()
    cost = _cost_estimate(B, C, HW, K, H2, itemsize, w_bytes)
    per_sample = C * HW * itemsize

    # Whole-sample blocks need 2x in + 2x out (double-buffered) + weights
    # + temporaries; if that busts the per-core VMEM budget (notably v7x's
    # 64 MiB), use the two-pass spatially tiled kernel instead.
    need_single = 5 * per_sample + 2 * w_bytes + (4 << 20)
    if force_two_pass or need_single > ceiling:
        out3 = _run_two_pass(x3, weights, B=B, C=C, HW=HW, K=K, H2=H2,
                             itemsize=itemsize, w_bytes=w_bytes,
                             ceiling=ceiling, cost=cost,
                             compute_dtype=compute_dtype)
    else:
        out3 = _run_fused(x3, weights, B=B, C=C, HW=HW, K=K, H2=H2,
                          w_bytes=w_bytes, ceiling=ceiling, cost=cost,
                          compute_dtype=compute_dtype, per_sample=per_sample)
    return out3.reshape(B, C, H, W)


# ---------------------------------------------------------------------------
# Synthetic parameters & pure-JAX reference (mirrors the PyTorch module)
# ---------------------------------------------------------------------------
def init_params(key, input_dim, num_categories):
    """Weights stored as (in, out) so the kernel computes y = x @ W + b
    (equivalent to PyTorch's x @ W.T + b); per-adapter weights are stacked
    along a leading num_categories axis."""
    c, h, k = input_dim, input_dim // 2, num_categories
    keys = jax.random.split(key, 8)
    s = 0.5
    return {
        "wc": s * jax.random.normal(keys[0], (c, k), jnp.float32),
        "bc": s * jax.random.normal(keys[1], (1, k), jnp.float32),
        "w1": s * jax.random.normal(keys[2], (k, c, h), jnp.float32),
        "b1": s * jax.random.normal(keys[3], (k, 1, h), jnp.float32),
        "w2": s * jax.random.normal(keys[4], (k, h, c), jnp.float32),
        "b2": s * jax.random.normal(keys[5], (k, 1, c), jnp.float32),
        "wg": s * jax.random.normal(keys[6], (k, c, c), jnp.float32),
        "bg": s * jax.random.normal(keys[7], (k, 1, c), jnp.float32),
    }


def _reference(x_nchw, params):
    """Pure-JAX reference mirroring CategorySpecificAdapter.forward."""
    B, C, H, W = x_nchw.shape
    xf = x_nchw.astype(jnp.float32)
    ctx = xf.mean(axis=(2, 3))                                     # (B, C)
    probs = jax.nn.softmax(ctx @ params["wc"] + params["bc"], axis=1)
    fused = jnp.zeros_like(xf)
    for i in range(params["w1"].shape[0]):
        h = jnp.maximum(ctx @ params["w1"][i] + params["b1"][i], 0.0)
        cw = jax.nn.sigmoid(h @ params["w2"][i] + params["b2"][i])
        g = jax.nn.sigmoid(ctx @ params["wg"][i] + params["bg"][i])
        adapted = (g[:, :, None, None] * xf
                   + (1.0 - g)[:, :, None, None] * cw[:, :, None, None])
        fused = fused + probs[:, i][:, None, None, None] * adapted
    return fused.astype(x_nchw.dtype)


if __name__ == "__main__":
    key = jax.random.PRNGKey(0)
    kx, kp, kx2 = jax.random.split(key, 3)

    B, C, H, W = 2, 4, 16, 16
    NUM_CATEGORIES = 3
    x = jax.random.normal(kx, (B, C, H, W), jnp.float32)
    params = init_params(kp, C, NUM_CATEGORIES)
    ref = _reference(x, params)

    # Primary fused path (single HBM read + write of x).
    out = jax.block_until_ready(category_specific_adapter(x, params))
    assert out.shape == (B, C, H, W)
    assert jnp.allclose(out, ref, atol=1e-4, rtol=1e-4), "fused path mismatch"

    # Two-pass spatially tiled fallback (used for huge samples / v7x VMEM).
    out_tp = jax.block_until_ready(
        category_specific_adapter(x, params, force_two_pass=True))
    assert jnp.allclose(out_tp, ref, atol=1e-4, rtol=1e-4), "two-pass mismatch"

    # Non-multiple-of-128 spatial size: handled with no pad/slice passes.
    x_odd = jax.random.normal(kx2, (B, C, 10, 10), jnp.float32)
    ref_odd = _reference(x_odd, params)
    out_odd = jax.block_until_ready(category_specific_adapter(x_odd, params))
    assert jnp.allclose(out_odd, ref_odd, atol=1e-4, rtol=1e-4), "odd-HW mismatch"

    print("KERNEL_OK")
</pallas_src>

<mosaic_0001>
module attributes {stable_mosaic.version = 11 : i64} {
  func.func @_csa_fused_kernel(%arg0: i32, %arg1: memref<2x4x256xf32, #tpu.memory_space<vmem>>, %arg2: memref<4x3xf32, #tpu.memory_space<vmem>>, %arg3: memref<1x3xf32, #tpu.memory_space<vmem>>, %arg4: memref<4x6xf32, #tpu.memory_space<vmem>>, %arg5: memref<1x6xf32, #tpu.memory_space<vmem>>, %arg6: memref<3x2x4xf32, #tpu.memory_space<vmem>>, %arg7: memref<3x1x4xf32, #tpu.memory_space<vmem>>, %arg8: memref<4x12xf32, #tpu.memory_space<vmem>>, %arg9: memref<1x12xf32, #tpu.memory_space<vmem>>, %arg10: memref<2x4x256xf32, #tpu.memory_space<vmem>>) attributes {dimension_semantics = [#tpu.dimension_semantics<parallel>], iteration_bounds = array<i64: 1>, scalar_prefetch = 0 : i64, scratch_operands = 0 : i64, tpu.core_type = #tpu.core_type<tc>, window_params = [{transform_indices = @transform_0, window_bounds = array<i64: 2, 4, 256>}, {pipeline_mode = #tpu.pipeline_mode<synchronous>, transform_indices = @transform_1, window_bounds = array<i64: 4, 3>}, {pipeline_mode = #tpu.pipeline_mode<synchronous>, transform_indices = @transform_2, window_bounds = array<i64: 1, 3>}, {pipeline_mode = #tpu.pipeline_mode<synchronous>, transform_indices = @transform_3, window_bounds = array<i64: 4, 6>}, {pipeline_mode = #tpu.pipeline_mode<synchronous>, transform_indices = @transform_4, window_bounds = array<i64: 1, 6>}, {pipeline_mode = #tpu.pipeline_mode<synchronous>, transform_indices = @transform_5, window_bounds = array<i64: 3, 2, 4>}, {pipeline_mode = #tpu.pipeline_mode<synchronous>, transform_indices = @transform_6, window_bounds = array<i64: 3, 1, 4>}, {pipeline_mode = #tpu.pipeline_mode<synchronous>, transform_indices = @transform_7, window_bounds = array<i64: 4, 12>}, {pipeline_mode = #tpu.pipeline_mode<synchronous>, transform_indices = @transform_8, window_bounds = array<i64: 1, 12>}, {transform_indices = @transform_9, window_bounds = array<i64: 2, 4, 256>}]} {
    %c0 = arith.constant 0 : index
    %c0_0 = arith.constant 0 : index
    %c0_1 = arith.constant 0 : index
    %0 = vector.load %arg1[%c0, %c0_0, %c0_1] : memref<2x4x256xf32, #tpu.memory_space<vmem>>, vector<2x4x256xf32>
    %cst = arith.constant dense<0.000000e+00> : vector<2x4xf32>
    %1 = vector.multi_reduction <add>, %0, %cst [2] : vector<2x4x256xf32> to vector<2x4xf32>
    %cst_2 = arith.constant 3.906250e-03 : f32
    %2 = vector.broadcast %cst_2 : f32 to vector<2x4xf32>
    %3 = arith.mulf %1, %2 : vector<2x4xf32>
    %c0_3 = arith.constant 0 : index
    %c0_4 = arith.constant 0 : index
    %4 = vector.load %arg2[%c0_3, %c0_4] : memref<4x3xf32, #tpu.memory_space<vmem>>, vector<4x3xf32>
    %c0_5 = arith.constant 0 : index
    %c0_6 = arith.constant 0 : index
    %5 = vector.load %arg3[%c0_5, %c0_6] : memref<1x3xf32, #tpu.memory_space<vmem>>, vector<1x3xf32>
    %c0_7 = arith.constant 0 : index
    %c0_8 = arith.constant 0 : index
    %6 = vector.load %arg4[%c0_7, %c0_8] : memref<4x6xf32, #tpu.memory_space<vmem>>, vector<4x6xf32>
    %c0_9 = arith.constant 0 : index
    %c0_10 = arith.constant 0 : index
    %7 = vector.load %arg5[%c0_9, %c0_10] : memref<1x6xf32, #tpu.memory_space<vmem>>, vector<1x6xf32>
    %c0_11 = arith.constant 0 : index
    %c0_12 = arith.constant 0 : index
    %c0_13 = arith.constant 0 : index
    %8 = vector.load %arg6[%c0_11, %c0_12, %c0_13] : memref<3x2x4xf32, #tpu.memory_space<vmem>>, vector<3x2x4xf32>
    %c0_14 = arith.constant 0 : index
    %c0_15 = arith.constant 0 : index
    %c0_16 = arith.constant 0 : index
    %9 = vector.load %arg7[%c0_14, %c0_15, %c0_16] : memref<3x1x4xf32, #tpu.memory_space<vmem>>, vector<3x1x4xf32>
    %c0_17 = arith.constant 0 : index
    %c0_18 = arith.constant 0 : index
    %10 = vector.load %arg8[%c0_17, %c0_18] : memref<4x12xf32, #tpu.memory_space<vmem>>, vector<4x12xf32>
    %c0_19 = arith.constant 0 : index
    %c0_20 = arith.constant 0 : index
    %11 = vector.load %arg9[%c0_19, %c0_20] : memref<1x12xf32, #tpu.memory_space<vmem>>, vector<1x12xf32>
    %cst_21 = arith.constant dense<0.000000e+00> : vector<2x3xf32>
    %12 = tpu.matmul %3, %4, %cst_21 {dimension_numbers = #tpu.dot_dimension_numbers<[1], [0], [0], [1], [0, 0, 1, 1], [], []>} : vector<2x4xf32>, vector<4x3xf32>, vector<2x3xf32> -> vector<2x3xf32>
    %13 = vector.broadcast %5 : vector<1x3xf32> to vector<2x3xf32>
    %14 = arith.addf %12, %13 : vector<2x3xf32>
    %cst_22 = arith.constant dense<0xFF800000> : vector<2xf32>
    %15 = vector.multi_reduction <maximumf>, %14, %cst_22 [1] : vector<2x3xf32> to vector<2xf32>
    %cst_23 = arith.constant 0xFF800000 : f32
    %16 = vector.broadcast %cst_23 : f32 to vector<2xf32>
    %17 = arith.maximumf %16, %15 : vector<2xf32>
    %18 = vector.shape_cast %17 : vector<2xf32> to vector<2x1xf32>
    %19 = vector.broadcast %18 : vector<2x1xf32> to vector<2x3xf32>
    %20 = arith.subf %14, %19 : vector<2x3xf32>
    %21 = math.exp %20 : vector<2x3xf32>
    %cst_24 = arith.constant dense<0.000000e+00> : vector<2xf32>
    %22 = vector.multi_reduction <add>, %21, %cst_24 [1] : vector<2x3xf32> to vector<2xf32>
    %23 = vector.shape_cast %22 : vector<2xf32> to vector<2x1xf32>
    %24 = vector.broadcast %23 : vector<2x1xf32> to vector<2x3xf32>
    %25 = arith.divf %21, %24 : vector<2x3xf32>
    %cst_25 = arith.constant dense<0.000000e+00> : vector<2x12xf32>
    %26 = tpu.matmul %3, %10, %cst_25 {dimension_numbers = #tpu.dot_dimension_numbers<[1], [0], [0], [1], [0, 0, 1, 1], [], []>} : vector<2x4xf32>, vector<4x12xf32>, vector<2x12xf32> -> vector<2x12xf32>
    %27 = vector.broadcast %11 : vector<1x12xf32> to vector<2x12xf32>
    %28 = arith.addf %26, %27 : vector<2x12xf32>
    %29 = arith.negf %28 : vector<2x12xf32>
    %30 = math.exp %29 : vector<2x12xf32>
    %cst_26 = arith.constant 1.000000e+00 : f32
    %31 = vector.broadcast %cst_26 : f32 to vector<2x12xf32>
    %32 = arith.addf %31, %30 : vector<2x12xf32>
    %33 = arith.divf %31, %32 : vector<2x12xf32>
    %cst_27 = arith.constant dense<0.000000e+00> : vector<2x6xf32>
    %34 = tpu.matmul %3, %6, %cst_27 {dimension_numbers = #tpu.dot_dimension_numbers<[1], [0], [0], [1], [0, 0, 1, 1], [], []>} : vector<2x4xf32>, vector<4x6xf32>, vector<2x6xf32> -> vector<2x6xf32>
    %35 = vector.broadcast %7 : vector<1x6xf32> to vector<2x6xf32>
    %36 = arith.addf %34, %35 : vector<2x6xf32>
    %cst_28 = arith.constant 0.000000e+00 : f32
    %37 = vector.broadcast %cst_28 : f32 to vector<2x6xf32>
    %38 = arith.maximumf %36, %37 : vector<2x6xf32>
    %cst_29 = arith.constant 0.000000e+00 : f32
    %39 = vector.broadcast %cst_29 : f32 to vector<2x4xf32>
    %cst_30 = arith.constant 0.000000e+00 : f32
    %40 = vector.broadcast %cst_30 : f32 to vector<2x4xf32>
    %41 = vector.extract_strided_slice %38 {offsets = [0, 0], sizes = [2, 2], strides = [1, 1]} : vector<2x6xf32> to vector<2x2xf32>
    %42 = vector.extract_strided_slice %8 {offsets = [0, 0, 0], sizes = [1, 2, 4], strides = [1, 1, 1]} : vector<3x2x4xf32> to vector<1x2x4xf32>
    %43 = vector.shape_cast %42 : vector<1x2x4xf32> to vector<2x4xf32>
    %cst_31 = arith.constant dense<0.000000e+00> : vector<2x4xf32>
    %44 = tpu.matmul %41, %43, %cst_31 {dimension_numbers = #tpu.dot_dimension_numbers<[1], [0], [0], [1], [0, 0, 1, 1], [], []>} : vector<2x2xf32>, vector<2x4xf32>, vector<2x4xf32> -> vector<2x4xf32>
    %45 = vector.extract_strided_slice %9 {offsets = [0, 0, 0], sizes = [1, 1, 4], strides = [1, 1, 1]} : vector<3x1x4xf32> to vector<1x1x4xf32>
    %46 = vector.shape_cast %45 : vector<1x1x4xf32> to vector<1x4xf32>
    %47 = vector.broadcast %46 : vector<1x4xf32> to vector<2x4xf32>
    %48 = arith.addf %44, %47 : vector<2x4xf32>
    %49 = arith.negf %48 : vector<2x4xf32>
    %50 = math.exp %49 : vector<2x4xf32>
    %cst_32 = arith.constant 1.000000e+00 : f32
    %51 = vector.broadcast %cst_32 : f32 to vector<2x4xf32>
    %52 = arith.addf %51, %50 : vector<2x4xf32>
    %53 = arith.divf %51, %52 : vector<2x4xf32>
    %54 = vector.extract_strided_slice %33 {offsets = [0, 0], sizes = [2, 4], strides = [1, 1]} : vector<2x12xf32> to vector<2x4xf32>
    %55 = vector.extract_strided_slice %25 {offsets = [0, 0], sizes = [2, 1], strides = [1, 1]} : vector<2x3xf32> to vector<2x1xf32>
    %56 = vector.broadcast %55 : vector<2x1xf32> to vector<2x4xf32>
    %57 = arith.mulf %56, %54 : vector<2x4xf32>
    %58 = arith.addf %39, %57 : vector<2x4xf32>
    %cst_33 = arith.constant 1.000000e+00 : f32
    %59 = vector.broadcast %cst_33 : f32 to vector<2x4xf32>
    %60 = arith.subf %59, %54 : vector<2x4xf32>
    %61 = vector.broadcast %55 : vector<2x1xf32> to vector<2x4xf32>
    %62 = arith.mulf %61, %60 : vector<2x4xf32>
    %63 = arith.mulf %62, %53 : vector<2x4xf32>
    %64 = arith.addf %40, %63 : vector<2x4xf32>
    %65 = vector.extract_strided_slice %38 {offsets = [0, 2], sizes = [2, 2], strides = [1, 1]} : vector<2x6xf32> to vector<2x2xf32>
    %66 = vector.extract_strided_slice %8 {offsets = [1, 0, 0], sizes = [1, 2, 4], strides = [1, 1, 1]} : vector<3x2x4xf32> to vector<1x2x4xf32>
    %67 = vector.shape_cast %66 : vector<1x2x4xf32> to vector<2x4xf32>
    %cst_34 = arith.constant dense<0.000000e+00> : vector<2x4xf32>
    %68 = tpu.matmul %65, %67, %cst_34 {dimension_numbers = #tpu.dot_dimension_numbers<[1], [0], [0], [1], [0, 0, 1, 1], [], []>} : vector<2x2xf32>, vector<2x4xf32>, vector<2x4xf32> -> vector<2x4xf32>
    %69 = vector.extract_strided_slice %9 {offsets = [1, 0, 0], sizes = [1, 1, 4], strides = [1, 1, 1]} : vector<3x1x4xf32> to vector<1x1x4xf32>
    %70 = vector.shape_cast %69 : vector<1x1x4xf32> to vector<1x4xf32>
    %71 = vector.broadcast %70 : vector<1x4xf32> to vector<2x4xf32>
    %72 = arith.addf %68, %71 : vector<2x4xf32>
    %73 = arith.negf %72 : vector<2x4xf32>
    %74 = math.exp %73 : vector<2x4xf32>
    %cst_35 = arith.constant 1.000000e+00 : f32
    %75 = vector.broadcast %cst_35 : f32 to vector<2x4xf32>
    %76 = arith.addf %75, %74 : vector<2x4xf32>
    %77 = arith.divf %75, %76 : vector<2x4xf32>
    %78 = vector.extract_strided_slice %33 {offsets = [0, 4], sizes = [2, 4], strides = [1, 1]} : vector<2x12xf32> to vector<2x4xf32>
    %79 = vector.extract_strided_slice %25 {offsets = [0, 1], sizes = [2, 1], strides = [1, 1]} : vector<2x3xf32> to vector<2x1xf32>
    %80 = vector.broadcast %79 : vector<2x1xf32> to vector<2x4xf32>
    %81 = arith.mulf %80, %78 : vector<2x4xf32>
    %82 = arith.addf %58, %81 : vector<2x4xf32>
    %cst_36 = arith.constant 1.000000e+00 : f32
    %83 = vector.broadcast %cst_36 : f32 to vector<2x4xf32>
    %84 = arith.subf %83, %78 : vector<2x4xf32>
    %85 = vector.broadcast %79 : vector<2x1xf32> to vector<2x4xf32>
    %86 = arith.mulf %85, %84 : vector<2x4xf32>
    %87 = arith.mulf %86, %77 : vector<2x4xf32>
    %88 = arith.addf %64, %87 : vector<2x4xf32>
    %89 = vector.extract_strided_slice %38 {offsets = [0, 4], sizes = [2, 2], strides = [1, 1]} : vector<2x6xf32> to vector<2x2xf32>
    %90 = vector.extract_strided_slice %8 {offsets = [2, 0, 0], sizes = [1, 2, 4], strides = [1, 1, 1]} : vector<3x2x4xf32> to vector<1x2x4xf32>
    %91 = vector.shape_cast %90 : vector<1x2x4xf32> to vector<2x4xf32>
    %cst_37 = arith.constant dense<0.000000e+00> : vector<2x4xf32>
    %92 = tpu.matmul %89, %91, %cst_37 {dimension_numbers = #tpu.dot_dimension_numbers<[1], [0], [0], [1], [0, 0, 1, 1], [], []>} : vector<2x2xf32>, vector<2x4xf32>, vector<2x4xf32> -> vector<2x4xf32>
    %93 = vector.extract_strided_slice %9 {offsets = [2, 0, 0], sizes = [1, 1, 4], strides = [1, 1, 1]} : vector<3x1x4xf32> to vector<1x1x4xf32>
    %94 = vector.shape_cast %93 : vector<1x1x4xf32> to vector<1x4xf32>
    %95 = vector.broadcast %94 : vector<1x4xf32> to vector<2x4xf32>
    %96 = arith.addf %92, %95 : vector<2x4xf32>
    %97 = arith.negf %96 : vector<2x4xf32>
    %98 = math.exp %97 : vector<2x4xf32>
    %cst_38 = arith.constant 1.000000e+00 : f32
    %99 = vector.broadcast %cst_38 : f32 to vector<2x4xf32>
    %100 = arith.addf %99, %98 : vector<2x4xf32>
    %101 = arith.divf %99, %100 : vector<2x4xf32>
    %102 = vector.extract_strided_slice %33 {offsets = [0, 8], sizes = [2, 4], strides = [1, 1]} : vector<2x12xf32> to vector<2x4xf32>
    %103 = vector.extract_strided_slice %25 {offsets = [0, 2], sizes = [2, 1], strides = [1, 1]} : vector<2x3xf32> to vector<2x1xf32>
    %104 = vector.broadcast %103 : vector<2x1xf32> to vector<2x4xf32>
    %105 = arith.mulf %104, %102 : vector<2x4xf32>
    %106 = arith.addf %82, %105 : vector<2x4xf32>
    %cst_39 = arith.constant 1.000000e+00 : f32
    %107 = vector.broadcast %cst_39 : f32 to vector<2x4xf32>
    %108 = arith.subf %107, %102 : vector<2x4xf32>
    %109 = vector.broadcast %103 : vector<2x1xf32> to vector<2x4xf32>
    %110 = arith.mulf %109, %108 : vector<2x4xf32>
    %111 = arith.mulf %110, %101 : vector<2x4xf32>
    %112 = arith.addf %88, %111 : vector<2x4xf32>
    %113 = vector.shape_cast %106 : vector<2x4xf32> to vector<2x4x1xf32>
    %114 = vector.shape_cast %112 : vector<2x4xf32> to vector<2x4x1xf32>
    %115 = vector.broadcast %113 : vector<2x4x1xf32> to vector<2x4x256xf32>
    %116 = arith.mulf %0, %115 : vector<2x4x256xf32>
    %117 = vector.broadcast %114 : vector<2x4x1xf32> to vector<2x4x256xf32>
    %118 = arith.addf %116, %117 : vector<2x4x256xf32>
    %c0_40 = arith.constant 0 : index
    %c0_41 = arith.constant 0 : index
    %c0_42 = arith.constant 0 : index
    %119 = vector.load %arg10[%c0_40, %c0_41, %c0_42] : memref<2x4x256xf32, #tpu.memory_space<vmem>>, vector<2x4x256xf32>
    tpu.vector_store %arg10[%c0_40, %c0_41, %c0_42], %118 {strides = array<i32>} : memref<2x4x256xf32, #tpu.memory_space<vmem>>, vector<2x4x256xf32>,
    return
  }
  func.func @transform_0(%arg0: i32) -> (i32, i32, i32) {
    %c0_i32 = arith.constant 0 : i32
    %c0_i32_0 = arith.constant 0 : i32
    %c0_i32_1 = arith.constant 0 : i32
    return %arg0, %c0_i32, %c0_i32_0 : i32, i32, i32
  }
  func.func @transform_1(%arg0: i32) -> (i32, i32) {
    %c0_i32 = arith.constant 0 : i32
    %c0_i32_0 = arith.constant 0 : i32
    %c0_i32_1 = arith.constant 0 : i32
    return %c0_i32, %c0_i32_0 : i32, i32
  }
  func.func @transform_2(%arg0: i32) -> (i32, i32) {
    %c0_i32 = arith.constant 0 : i32
    %c0_i32_0 = arith.constant 0 : i32
    %c0_i32_1 = arith.constant 0 : i32
    return %c0_i32, %c0_i32_0 : i32, i32
  }
  func.func @transform_3(%arg0: i32) -> (i32, i32) {
    %c0_i32 = arith.constant 0 : i32
    %c0_i32_0 = arith.constant 0 : i32
    %c0_i32_1 = arith.constant 0 : i32
    return %c0_i32, %c0_i32_0 : i32, i32
  }
  func.func @transform_4(%arg0: i32) -> (i32, i32) {
    %c0_i32 = arith.constant 0 : i32
    %c0_i32_0 = arith.constant 0 : i32
    %c0_i32_1 = arith.constant 0 : i32
    return %c0_i32, %c0_i32_0 : i32, i32
  }
  func.func @transform_5(%arg0: i32) -> (i32, i32, i32) {
    %c0_i32 = arith.constant 0 : i32
    %c0_i32_0 = arith.constant 0 : i32
    %c0_i32_1 = arith.constant 0 : i32
    %c0_i32_2 = arith.constant 0 : i32
    return %c0_i32, %c0_i32_0, %c0_i32_1 : i32, i32, i32
  }
  func.func @transform_6(%arg0: i32) -> (i32, i32, i32) {
    %c0_i32 = arith.constant 0 : i32
    %c0_i32_0 = arith.constant 0 : i32
    %c0_i32_1 = arith.constant 0 : i32
    %c0_i32_2 = arith.constant 0 : i32
    return %c0_i32, %c0_i32_0, %c0_i32_1 : i32, i32, i32
  }
  func.func @transform_7(%arg0: i32) -> (i32, i32) {
    %c0_i32 = arith.constant 0 : i32
    %c0_i32_0 = arith.constant 0 : i32
    %c0_i32_1 = arith.constant 0 : i32
    return %c0_i32, %c0_i32_0 : i32, i32
  }
  func.func @transform_8(%arg0: i32) -> (i32, i32) {
    %c0_i32 = arith.constant 0 : i32
    %c0_i32_0 = arith.constant 0 : i32
    %c0_i32_1 = arith.constant 0 : i32
    return %c0_i32, %c0_i32_0 : i32, i32
  }
  func.func @transform_9(%arg0: i32) -> (i32, i32, i32) {
    %c0_i32 = arith.constant 0 : i32
    %c0_i32_0 = arith.constant 0 : i32
    %c0_i32_1 = arith.constant 0 : i32
    return %arg0, %c0_i32, %c0_i32_0 : i32, i32, i32
  }
}

module attributes {stable_mosaic.version = 11 : i64} {
  func.func @_csa_fused_kernel(%arg0: i32, %arg1: memref<2x4x256xf32, #tpu.memory_space<vmem>>, %arg2: memref<4x3xf32, #tpu.memory_space<vmem>>, %arg3: memref<1x3xf32, #tpu.memory_space<vmem>>, %arg4: memref<4x6xf32, #tpu.memory_space<vmem>>, %arg5: memref<1x6xf32, #tpu.memory_space<vmem>>, %arg6: memref<3x2x4xf32, #tpu.memory_space<vmem>>, %arg7: memref<3x1x4xf32, #tpu.memory_space<vmem>>, %arg8: memref<4x12xf32, #tpu.memory_space<vmem>>, %arg9: memref<1x12xf32, #tpu.memory_space<vmem>>, %arg10: memref<2x4x256xf32, #tpu.memory_space<vmem>>) attributes {dimension_semantics = [#tpu.dimension_semantics<parallel>], iteration_bounds = array<i64: 1>, scalar_prefetch = 0 : i64, scratch_operands = 0 : i64, tpu.core_type = #tpu.core_type<tc>, window_params = [{transform_indices = @transform_0, window_bounds = array<i64: 2, 4, 256>}, {pipeline_mode = #tpu.pipeline_mode<synchronous>, transform_indices = @transform_1, window_bounds = array<i64: 4, 3>}, {pipeline_mode = #tpu.pipeline_mode<synchronous>, transform_indices = @transform_2, window_bounds = array<i64: 1, 3>}, {pipeline_mode = #tpu.pipeline_mode<synchronous>, transform_indices = @transform_3, window_bounds = array<i64: 4, 6>}, {pipeline_mode = #tpu.pipeline_mode<synchronous>, transform_indices = @transform_4, window_bounds = array<i64: 1, 6>}, {pipeline_mode = #tpu.pipeline_mode<synchronous>, transform_indices = @transform_5, window_bounds = array<i64: 3, 2, 4>}, {pipeline_mode = #tpu.pipeline_mode<synchronous>, transform_indices = @transform_6, window_bounds = array<i64: 3, 1, 4>}, {pipeline_mode = #tpu.pipeline_mode<synchronous>, transform_indices = @transform_7, window_bounds = array<i64: 4, 12>}, {pipeline_mode = #tpu.pipeline_mode<synchronous>, transform_indices = @transform_8, window_bounds = array<i64: 1, 12>}, {transform_indices = @transform_9, window_bounds = array<i64: 2, 4, 256>}]} {
    %c0 = arith.constant 0 : index
    %c0_0 = arith.constant 0 : index
    %c0_1 = arith.constant 0 : index
    %0 = vector.load %arg1[%c0, %c0_0, %c0_1] : memref<2x4x256xf32, #tpu.memory_space<vmem>>, vector<2x4x256xf32>
    %cst = arith.constant dense<0.000000e+00> : vector<2x4xf32>
    %1 = vector.multi_reduction <add>, %0, %cst [2] : vector<2x4x256xf32> to vector<2x4xf32>
    %cst_2 = arith.constant 3.906250e-03 : f32
    %2 = vector.broadcast %cst_2 : f32 to vector<2x4xf32>
    %3 = arith.mulf %1, %2 : vector<2x4xf32>
    %c0_3 = arith.constant 0 : index
    %c0_4 = arith.constant 0 : index
    %4 = vector.load %arg2[%c0_3, %c0_4] : memref<4x3xf32, #tpu.memory_space<vmem>>, vector<4x3xf32>
    %c0_5 = arith.constant 0 : index
    %c0_6 = arith.constant 0 : index
    %5 = vector.load %arg3[%c0_5, %c0_6] : memref<1x3xf32, #tpu.memory_space<vmem>>, vector<1x3xf32>
    %c0_7 = arith.constant 0 : index
    %c0_8 = arith.constant 0 : index
    %6 = vector.load %arg4[%c0_7, %c0_8] : memref<4x6xf32, #tpu.memory_space<vmem>>, vector<4x6xf32>
    %c0_9 = arith.constant 0 : index
    %c0_10 = arith.constant 0 : index
    %7 = vector.load %arg5[%c0_9, %c0_10] : memref<1x6xf32, #tpu.memory_space<vmem>>, vector<1x6xf32>
    %c0_11 = arith.constant 0 : index
    %c0_12 = arith.constant 0 : index
    %c0_13 = arith.constant 0 : index
    %8 = vector.load %arg6[%c0_11, %c0_12, %c0_13] : memref<3x2x4xf32, #tpu.memory_space<vmem>>, vector<3x2x4xf32>
    %c0_14 = arith.constant 0 : index
    %c0_15 = arith.constant 0 : index
    %c0_16 = arith.constant 0 : index
    %9 = vector.load %arg7[%c0_14, %c0_15, %c0_16] : memref<3x1x4xf32, #tpu.memory_space<vmem>>, vector<3x1x4xf32>
    %c0_17 = arith.constant 0 : index
    %c0_18 = arith.constant 0 : index
    %10 = vector.load %arg8[%c0_17, %c0_18] : memref<4x12xf32, #tpu.memory_space<vmem>>, vector<4x12xf32>
    %c0_19 = arith.constant 0 : index
    %c0_20 = arith.constant 0 : index
    %11 = vector.load %arg9[%c0_19, %c0_20] : memref<1x12xf32, #tpu.memory_space<vmem>>, vector<1x12xf32>
    %cst_21 = arith.constant dense<0.000000e+00> : vector<2x3xf32>
    %12 = tpu.matmul %3, %4, %cst_21 {dimension_numbers = #tpu.dot_dimension_numbers<[1], [0], [0], [1], [0, 0, 1, 1], [], []>} : vector<2x4xf32>, vector<4x3xf32>, vector<2x3xf32> -> vector<2x3xf32>
    %13 = vector.broadcast %5 : vector<1x3xf32> to vector<2x3xf32>
    %14 = arith.addf %12, %13 : vector<2x3xf32>
    %cst_22 = arith.constant dense<0xFF800000> : vector<2xf32>
    %15 = vector.multi_reduction <maximumf>, %14, %cst_22 [1] : vector<2x3xf32> to vector<2xf32>
    %cst_23 = arith.constant 0xFF800000 : f32
    %16 = vector.broadcast %cst_23 : f32 to vector<2xf32>
    %17 = arith.maximumf %16, %15 : vector<2xf32>
    %18 = vector.shape_cast %17 : vector<2xf32> to vector<2x1xf32>
    %19 = vector.broadcast %18 : vector<2x1xf32> to vector<2x3xf32>
    %20 = arith.subf %14, %19 : vector<2x3xf32>
    %21 = math.exp %20 : vector<2x3xf32>
    %cst_24 = arith.constant dense<0.000000e+00> : vector<2xf32>
    %22 = vector.multi_reduction <add>, %21, %cst_24 [1] : vector<2x3xf32> to vector<2xf32>
    %23 = vector.shape_cast %22 : vector<2xf32> to vector<2x1xf32>
    %24 = vector.broadcast %23 : vector<2x1xf32> to vector<2x3xf32>
    %25 = arith.divf %21, %24 : vector<2x3xf32>
    %cst_25 = arith.constant dense<0.000000e+00> : vector<2x12xf32>
    %26 = tpu.matmul %3, %10, %cst_25 {dimension_numbers = #tpu.dot_dimension_numbers<[1], [0], [0], [1], [0, 0, 1, 1], [], []>} : vector<2x4xf32>, vector<4x12xf32>, vector<2x12xf32> -> vector<2x12xf32>
    %27 = vector.broadcast %11 : vector<1x12xf32> to vector<2x12xf32>
    %28 = arith.addf %26, %27 : vector<2x12xf32>
    %29 = arith.negf %28 : vector<2x12xf32>
    %30 = math.exp %29 : vector<2x12xf32>
    %cst_26 = arith.constant 1.000000e+00 : f32
    %31 = vector.broadcast %cst_26 : f32 to vector<2x12xf32>
    %32 = arith.addf %31, %30 : vector<2x12xf32>
    %33 = arith.divf %31, %32 : vector<2x12xf32>
    %cst_27 = arith.constant dense<0.000000e+00> : vector<2x6xf32>
    %34 = tpu.matmul %3, %6, %cst_27 {dimension_numbers = #tpu.dot_dimension_numbers<[1], [0], [0], [1], [0, 0, 1, 1], [], []>} : vector<2x4xf32>, vector<4x6xf32>, vector<2x6xf32> -> vector<2x6xf32>
    %35 = vector.broadcast %7 : vector<1x6xf32> to vector<2x6xf32>
    %36 = arith.addf %34, %35 : vector<2x6xf32>
    %cst_28 = arith.constant 0.000000e+00 : f32
    %37 = vector.broadcast %cst_28 : f32 to vector<2x6xf32>
    %38 = arith.maximumf %36, %37 : vector<2x6xf32>
    %cst_29 = arith.constant 0.000000e+00 : f32
    %39 = vector.broadcast %cst_29 : f32 to vector<2x4xf32>
    %cst_30 = arith.constant 0.000000e+00 : f32
    %40 = vector.broadcast %cst_30 : f32 to vector<2x4xf32>
    %41 = vector.extract_strided_slice %38 {offsets = [0, 0], sizes = [2, 2], strides = [1, 1]} : vector<2x6xf32> to vector<2x2xf32>
    %42 = vector.extract_strided_slice %8 {offsets = [0, 0, 0], sizes = [1, 2, 4], strides = [1, 1, 1]} : vector<3x2x4xf32> to vector<1x2x4xf32>
    %43 = vector.shape_cast %42 : vector<1x2x4xf32> to vector<2x4xf32>
    %cst_31 = arith.constant dense<0.000000e+00> : vector<2x4xf32>
    %44 = tpu.matmul %41, %43, %cst_31 {dimension_numbers = #tpu.dot_dimension_numbers<[1], [0], [0], [1], [0, 0, 1, 1], [], []>} : vector<2x2xf32>, vector<2x4xf32>, vector<2x4xf32> -> vector<2x4xf32>
    %45 = vector.extract_strided_slice %9 {offsets = [0, 0, 0], sizes = [1, 1, 4], strides = [1, 1, 1]} : vector<3x1x4xf32> to vector<1x1x4xf32>
    %46 = vector.shape_cast %45 : vector<1x1x4xf32> to vector<1x4xf32>
    %47 = vector.broadcast %46 : vector<1x4xf32> to vector<2x4xf32>
    %48 = arith.addf %44, %47 : vector<2x4xf32>
    %49 = arith.negf %48 : vector<2x4xf32>
    %50 = math.exp %49 : vector<2x4xf32>
    %cst_32 = arith.constant 1.000000e+00 : f32
    %51 = vector.broadcast %cst_32 : f32 to vector<2x4xf32>
    %52 = arith.addf %51, %50 : vector<2x4xf32>
    %53 = arith.divf %51, %52 : vector<2x4xf32>
    %54 = vector.extract_strided_slice %33 {offsets = [0, 0], sizes = [2, 4], strides = [1, 1]} : vector<2x12xf32> to vector<2x4xf32>
    %55 = vector.extract_strided_slice %25 {offsets = [0, 0], sizes = [2, 1], strides = [1, 1]} : vector<2x3xf32> to vector<2x1xf32>
    %56 = vector.broadcast %55 : vector<2x1xf32> to vector<2x4xf32>
    %57 = arith.mulf %56, %54 : vector<2x4xf32>
    %58 = arith.addf %39, %57 : vector<2x4xf32>
    %cst_33 = arith.constant 1.000000e+00 : f32
    %59 = vector.broadcast %cst_33 : f32 to vector<2x4xf32>
    %60 = arith.subf %59, %54 : vector<2x4xf32>
    %61 = vector.broadcast %55 : vector<2x1xf32> to vector<2x4xf32>
    %62 = arith.mulf %61, %60 : vector<2x4xf32>
    %63 = arith.mulf %62, %53 : vector<2x4xf32>
    %64 = arith.addf %40, %63 : vector<2x4xf32>
    %65 = vector.extract_strided_slice %38 {offsets = [0, 2], sizes = [2, 2], strides = [1, 1]} : vector<2x6xf32> to vector<2x2xf32>
    %66 = vector.extract_strided_slice %8 {offsets = [1, 0, 0], sizes = [1, 2, 4], strides = [1, 1, 1]} : vector<3x2x4xf32> to vector<1x2x4xf32>
    %67 = vector.shape_cast %66 : vector<1x2x4xf32> to vector<2x4xf32>
    %cst_34 = arith.constant dense<0.000000e+00> : vector<2x4xf32>
    %68 = tpu.matmul %65, %67, %cst_34 {dimension_numbers = #tpu.dot_dimension_numbers<[1], [0], [0], [1], [0, 0, 1, 1], [], []>} : vector<2x2xf32>, vector<2x4xf32>, vector<2x4xf32> -> vector<2x4xf32>
    %69 = vector.extract_strided_slice %9 {offsets = [1, 0, 0], sizes = [1, 1, 4], strides = [1, 1, 1]} : vector<3x1x4xf32> to vector<1x1x4xf32>
    %70 = vector.shape_cast %69 : vector<1x1x4xf32> to vector<1x4xf32>
    %71 = vector.broadcast %70 : vector<1x4xf32> to vector<2x4xf32>
    %72 = arith.addf %68, %71 : vector<2x4xf32>
    %73 = arith.negf %72 : vector<2x4xf32>
    %74 = math.exp %73 : vector<2x4xf32>
    %cst_35 = arith.constant 1.000000e+00 : f32
    %75 = vector.broadcast %cst_35 : f32 to vector<2x4xf32>
    %76 = arith.addf %75, %74 : vector<2x4xf32>
    %77 = arith.divf %75, %76 : vector<2x4xf32>
    %78 = vector.extract_strided_slice %33 {offsets = [0, 4], sizes = [2, 4], strides = [1, 1]} : vector<2x12xf32> to vector<2x4xf32>
    %79 = vector.extract_strided_slice %25 {offsets = [0, 1], sizes = [2, 1], strides = [1, 1]} : vector<2x3xf32> to vector<2x1xf32>
    %80 = vector.broadcast %79 : vector<2x1xf32> to vector<2x4xf32>
    %81 = arith.mulf %80, %78 : vector<2x4xf32>
    %82 = arith.addf %58, %81 : vector<2x4xf32>
    %cst_36 = arith.constant 1.000000e+00 : f32
    %83 = vector.broadcast %cst_36 : f32 to vector<2x4xf32>
    %84 = arith.subf %83, %78 : vector<2x4xf32>
    %85 = vector.broadcast %79 : vector<2x1xf32> to vector<2x4xf32>
    %86 = arith.mulf %85, %84 : vector<2x4xf32>
    %87 = arith.mulf %86, %77 : vector<2x4xf32>
    %88 = arith.addf %64, %87 : vector<2x4xf32>
    %89 = vector.extract_strided_slice %38 {offsets = [0, 4], sizes = [2, 2], strides = [1, 1]} : vector<2x6xf32> to vector<2x2xf32>
    %90 = vector.extract_strided_slice %8 {offsets = [2, 0, 0], sizes = [1, 2, 4], strides = [1, 1, 1]} : vector<3x2x4xf32> to vector<1x2x4xf32>
    %91 = vector.shape_cast %90 : vector<1x2x4xf32> to vector<2x4xf32>
    %cst_37 = arith.constant dense<0.000000e+00> : vector<2x4xf32>
    %92 = tpu.matmul %89, %91, %cst_37 {dimension_numbers = #tpu.dot_dimension_numbers<[1], [0], [0], [1], [0, 0, 1, 1], [], []>} : vector<2x2xf32>, vector<2x4xf32>, vector<2x4xf32> -> vector<2x4xf32>
    %93 = vector.extract_strided_slice %9 {offsets = [2, 0, 0], sizes = [1, 1, 4], strides = [1, 1, 1]} : vector<3x1x4xf32> to vector<1x1x4xf32>
    %94 = vector.shape_cast %93 : vector<1x1x4xf32> to vector<1x4xf32>
    %95 = vector.broadcast %94 : vector<1x4xf32> to vector<2x4xf32>
    %96 = arith.addf %92, %95 : vector<2x4xf32>
    %97 = arith.negf %96 : vector<2x4xf32>
    %98 = math.exp %97 : vector<2x4xf32>
    %cst_38 = arith.constant 1.000000e+00 : f32
    %99 = vector.broadcast %cst_38 : f32 to vector<2x4xf32>
    %100 = arith.addf %99, %98 : vector<2x4xf32>
    %101 = arith.divf %99, %100 : vector<2x4xf32>
    %102 = vector.extract_strided_slice %33 {offsets = [0, 8], sizes = [2, 4], strides = [1, 1]} : vector<2x12xf32> to vector<2x4xf32>
    %103 = vector.extract_strided_slice %25 {offsets = [0, 2], sizes = [2, 1], strides = [1, 1]} : vector<2x3xf32> to vector<2x1xf32>
    %104 = vector.broadcast %103 : vector<2x1xf32> to vector<2x4xf32>
    %105 = arith.mulf %104, %102 : vector<2x4xf32>
    %106 = arith.addf %82, %105 : vector<2x4xf32>
    %cst_39 = arith.constant 1.000000e+00 : f32
    %107 = vector.broadcast %cst_39 : f32 to vector<2x4xf32>
    %108 = arith.subf %107, %102 : vector<2x4xf32>
    %109 = vector.broadcast %103 : vector<2x1xf32> to vector<2x4xf32>
    %110 = arith.mulf %109, %108 : vector<2x4xf32>
    %111 = arith.mulf %110, %101 : vector<2x4xf32>
    %112 = arith.addf %88, %111 : vector<2x4xf32>
    %113 = vector.shape_cast %106 : vector<2x4xf32> to vector<2x4x1xf32>
    %114 = vector.shape_cast %112 : vector<2x4xf32> to vector<2x4x1xf32>
    %115 = vector.broadcast %113 : vector<2x4x1xf32> to vector<2x4x256xf32>
    %116 = arith.mulf %0, %115 : vector<2x4x256xf32>
    %117 = vector.broadcast %114 : vector<2x4x1xf32> to vector<2x4x256xf32>
    %118 = arith.addf %116, %117 : vector<2x4x256xf32>
    %c0_40 = arith.constant 0 : index
    %c0_41 = arith.constant 0 : index
    %c0_42 = arith.constant 0 : index
    %119 = vector.load %arg10[%c0_40, %c0_41, %c0_42] : memref<2x4x256xf32, #tpu.memory_space<vmem>>, vector<2x4x256xf32>
    tpu.vector_store %arg10[%c0_40, %c0_41, %c0_42], %118 {strides = array<i32>} : memref<2x4x256xf32, #tpu.memory_space<vmem>>, vector<2x4x256xf32>,
    return
  }
  func.func @transform_0(%arg0: i32) -> (i32, i32, i32) {
    %c0_i32 = arith.constant 0 : i32
    %c0_i32_0 = arith.constant 0 : i32
    %c0_i32_1 = arith.constant 0 : i32
    return %arg0, %c0_i32, %c0_i32_0 : i32, i32, i32
  }
  func.func @transform_1(%arg0: i32) -> (i32, i32) {
    %c0_i32 = arith.constant 0 : i32
    %c0_i32_0 = arith.constant 0 : i32
    %c0_i32_1 = arith.constant 0 : i32
    return %c0_i32, %c0_i32_0 : i32, i32
  }
  func.func @transform_2(%arg0: i32) -> (i32, i32) {
    %c0_i32 = arith.constant 0 : i32
    %c0_i32_0 = arith.constant 0 : i32
    %c0_i32_1 = arith.constant 0 : i32
    return %c0_i32, %c0_i32_0 : i32, i32
  }
  func.func @transform_3(%arg0: i32) -> (i32, i32) {
    %c0_i32 = arith.constant 0 : i32
    %c0_i32_0 = arith.constant 0 : i32
    %c0_i32_1 = arith.constant 0 : i32
    return %c0_i32, %c0_i32_0 : i32, i32
  }
  func.func @transform_4(%arg0: i32) -> (i32, i32) {
    %c0_i32 = arith.constant 0 : i32
    %c0_i32_0 = arith.constant 0 : i32
    %c0_i32_1 = arith.constant 0 : i32
    return %c0_i32, %c0_i32_0 : i32, i32
  }
  func.func @transform_5(%arg0: i32) -> (i32, i32, i32) {
    %c0_i32 = arith.constant 0 : i32
    %c0_i32_0 = arith.constant 0 : i32
    %c0_i32_1 = arith.constant 0 : i32
    %c0_i32_2 = arith.constant 0 : i32
    return %c0_i32, %c0_i32_0, %c0_i32_1 : i32, i32, i32
  }
  func.func @transform_6(%arg0: i32) -> (i32, i32, i32) {
    %c0_i32 = arith.constant 0 : i32
    %c0_i32_0 = arith.constant 0 : i32
    %c0_i32_1 = arith.constant 0 : i32
    %c0_i32_2 = arith.constant 0 : i32
    return %c0_i32, %c0_i32_0, %c0_i32_1 : i32, i32, i32
  }
  func.func @transform_7(%arg0: i32) -> (i32, i32) {
    %c0_i32 = arith.constant 0 : i32
    %c0_i32_0 = arith.constant 0 : i32
    %c0_i32_1 = arith.constant 0 : i32
    return %c0_i32, %c0_i32_0 : i32, i32
  }
  func.func @transform_8(%arg0: i32) -> (i32, i32) {
    %c0_i32 = arith.constant 0 : i32
    %c0_i32_0 = arith.constant 0 : i32
    %c0_i32_1 = arith.constant 0 : i32
    return %c0_i32, %c0_i32_0 : i32, i32
  }
  func.func @transform_9(%arg0: i32) -> (i32, i32, i32) {
    %c0_i32 = arith.constant 0 : i32
    %c0_i32_0 = arith.constant 0 : i32
    %c0_i32_1 = arith.constant 0 : i32
    return %arg0, %c0_i32, %c0_i32_0 : i32, i32, i32
  }
}

</mosaic_0001>

<bundles_post_ra>
// kernel: tpu_custom_call.1
= control target key start
LH: loop header
LB: loop body
LE: loop exit
PB: predicated region body
PF: predicated region fallthrough
CT: control target
= control target key end

     0   :  { %14 = vsyncpa [#allocation3], 0  ;;  %s1185_s0 = inlined_call_operand.hbm [shape: f32[2,4,256], index: 0, kind: input, shape index: {}]   ;;  %s1186_s1 = inlined_call_operand.hbm [shape: f32[4,3], index: 1, kind: input, shape index: {}]   ;;  %s1187_s2 = inlined_call_operand.vmem [shape: f32[1,3], index: 2, kind: input, shape index: {}]   ;;  %s1188_s3 = inlined_call_operand.vmem [shape: f32[4,6], index: 3, kind: input, shape index: {}]   ;;  %s1189_s4 = inlined_call_operand.hbm [shape: f32[1,6], index: 4, kind: input, shape index: {}]   ;;  %s1190_s5 = inlined_call_operand.vmem [shape: f32[3,2,4], index: 5, kind: input, shape index: {}]   ;;  %s1191_s6 = inlined_call_operand.vmem [shape: f32[3,1,4], index: 6, kind: input, shape index: {}]   ;;  %s1192_s7 = inlined_call_operand.vmem [shape: f32[4,12], index: 7, kind: input, shape index: {}]   ;;  %s1193_s8 = inlined_call_operand.vmem [shape: f32[1,12], index: 8, kind: input, shape index: {}]   ;;  %s1194_s9 = inlined_call_operand.hbm [shape: f32[2,4,256], index: 9, kind: output, shape index: {}]  }
   0x1   :  { %15 = vsyncpa [#allocation6], 0 }
   0x2   :  { %16 = vsyncpa [#allocation4], 0  ;;  %s985_s30 = smov [#allocation5]   ;;  %s986_s11 = smov [#allocation2]  }
   0x3   :  { %s35_s10 = sshll.u32 %s985_s30, 4  ;;  %s22_s12 = sshll.u32 %s986_s11, 4  ;;  %s36_s10 = int_to_ptr.vmem [resolvable:$true] %s35_s10  ;;  %s1051_s12 = int_to_ptr.vmem [resolvable:$true] %s22_s12 }
   0x4   :  { %s891_s15 = scalar_lea.hbm %s1186_s1, 64 }
   0x5   :  { %p892_p0 = scmp.ne.s32.totalorder %s1186_s1, %s891_s15  ;;  %p895_p1 = scmp.lt.u32.totalorder %s891_s15, %s1186_s1 }
   0x7   :  { %p897_p2 = pnand %p895_p1, %p892_p0 }
   0x9   :  { %900 = shalt.err (!%p897_p2)
}
   0xa   :  { %s901_s20 = scalar_lea.vmem %s36_s10, 64  ;;  %p906_p4 = scmp.lt.s32.totalorder %s36_s10, %s36_s10 }
   0xb   :  { %p902_p3 = scmp.ne.s32.totalorder %s36_s10, %s901_s20  ;;  %p907_p5 = scmp.lt.s32.totalorder %s901_s20, %s901_s20 }
   0xd   :  { %p908_p6 = por %p907_p5, %p906_p4 }
   0xf   :  { %p909_p7 = pnand %p908_p6, %p902_p3 }
  0x11   :  { %912 = shalt.err (!%p909_p7)
}
  0x12   :  { %38 = dma.hbm_to_vmem [thread:$0]  %s1186_s1, 64, %s36_s10, [#allocation6]  }
  0x13   :  { %s913_s25 = scalar_lea.hbm %s1185_s0, 256 }
  0x14   :  { %p914_p8 = scmp.ne.s32.totalorder %s1185_s0, %s913_s25  ;;  %p917_p9 = scmp.lt.u32.totalorder %s913_s25, %s1185_s0 }
  0x16   :  { %p919_p10 = pnand %p917_p9, %p914_p8 }
  0x18   :  { %922 = shalt.err (!%p919_p10)
}
  0x19   :  { %s923_s30 = scalar_lea.vmem %s1051_s12, 256  ;;  %p928_p12 = scmp.lt.s32.totalorder %s1051_s12, %s1051_s12 }
  0x1a   :  { %p924_p11 = scmp.ne.s32.totalorder %s1051_s12, %s923_s30  ;;  %p929_p13 = scmp.lt.s32.totalorder %s923_s30, %s923_s30 }
  0x1c   :  { %p930_p0 = por %p929_p13, %p928_p12 }
  0x1e   :  { %p931_p1 = pnand %p930_p0, %p924_p11 }
  0x20   :  { %934 = shalt.err (!%p931_p1)
}
  0x21   :  { %s987_s1 = smov 128   ;;  %s988_s10 = smov 8  }
  0x22   :  { %28 = dma.hbm_to_vmem [thread:$0]  %s1185_s0, 256, %s1051_s12, [#allocation3], %s987_s1, %s987_s1, %s988_s10  }
  0x23   :  { %s989_s14 = smov [#allocation7]   ;;  %s935_s18 = scalar_lea.hbm %s1189_s4, 16 }
  0x24   :  { %s49_s15 = sshll.u32 %s989_s14, 4  ;;  %p936_p2 = scmp.ne.s32.totalorder %s1189_s4, %s935_s18  ;;  %s50_s15 = int_to_ptr.vmem [resolvable:$true] %s49_s15 }
  0x25   :  { %p939_p3 = scmp.lt.u32.totalorder %s935_s18, %s1189_s4 }
  0x27   :  { %p941_p4 = pnand %p939_p3, %p936_p2 }
  0x29   :  { %944 = shalt.err (!%p941_p4)
}
  0x2a   :  { %s945_s23 = scalar_lea.vmem %s50_s15, 16  ;;  %s949_s0 = scalar_lea.vmem %s50_s15, 32 }
  0x2b   :  { %p946_p5 = scmp.ne.s32.totalorder %s50_s15, %s945_s23  ;;  %p950_p6 = scmp.lt.s32.totalorder %s50_s15, %s50_s15 }
  0x2c   :  { %p951_p7 = scmp.lt.s32.totalorder %s949_s0, %s945_s23 }
  0x2e   :  { %p952_p8 = por %p951_p7, %p950_p6 }
  0x30   :  { %p953_p9 = pnand %p952_p8, %p946_p5 }
  0x32   :  { %956 = shalt.err (!%p953_p9)
}
  0x33   :  { %52 = dma.hbm_to_vmem [thread:$0]  %s1189_s4, 16, %s50_s15, [#allocation6]  }
  0x34   :  { %979 = dma.done.wait [#allocation3], 256  }
  0x35   :  { %980 = vsyncadd [#allocation3], 4294967040 }
  0x36   :  { %981 = dma.done.wait [#allocation6], 80  }
  0x37   :  { %982 = vsyncadd [#allocation6], 4294967216  ;;  %vm78_vm0 = vcmask 1043456   ;;  %v1097_v0 = vld [vmem:[#allocation2] sm:$0xff]  ;;  %v1099_v1 = vld [vmem:[#allocation2 + $0x8] sm:$0xff]  ;;  %v990_v12 = vmov 0.0   ;;  %v111_v13 = vlaneseq }
  0x38   :  { %v74_v2 = vcombine.high %v1097_v0, %v1097_v0  ;;  %v79_v3 = vsel %vm78_vm0, %v1097_v0, 0.0  ;;  %v75_v4 = vcombine.high %v1099_v1, %v1099_v1  ;;  %v84_v6 = vsel %vm78_vm0, %v1099_v1, 0.0  ;;  %v91_v10 = vld [vmem:[#allocation5] sm:$0xf]  ;;  %v101_v11 = vld [vmem:[%s1192_s7] sm:$0xf]  ;;  %819 = vmatprep.subr.mxu0 %v990_v12  ;;  %824 = vmatprep.subr.mxu1 %v990_v12 }
  0x39   :  { %820 = vmatpush3.msk.msra.mxu0 %vm78_vm0, %v91_v10  ;;  %vm991_vm1 = vmmov 0   ;;  %825 = vmatpush3.msk.msra.mxu1 %vm78_vm0, %v101_v11  ;;  %v112_v14 = vand.u32 127, %v111_v13  ;;  %v1118_v15 = vshrl.u32 %v111_v13, 7  ;;  %vm121_vm2 = vcmask 1041409   ;;  %v93_v23 = vld [vmem:[%s1188_s3] sm:$0xf] }
  0x3a   :  { %v80_v5 = vsel %vm78_vm0, %v74_v2, 0.0  ;;  %v85_v7 = vsel %vm78_vm0, %v75_v4, 0.0  ;;  %821 = vmatprep.mubr.msk.f32.mxu0 %vm991_vm1, %v990_v12  ;;  %826 = vmatprep.mubr.msk.f32.mxu1 %vm991_vm1, %v990_v12  ;;  %vm123_vm3 = vcmask 31744   ;;  %v95_v25 = vld [vmem:[%s1190_s5] sm:$0x3]  ;;  %vm386_vm4 = vcmask 1041408  }
  0x3b   :  { %v81_v8 = vadd.f32 %v80_v5, %v79_v3  ;;  %v86_v9 = vadd.f32 %v85_v7, %v84_v6  ;;  %829 = vmatprep.subr.mxu0 %v990_v12  ;;  %834 = vmatprep.subr.mxu1 %v990_v12  ;;  %v115_v17 = vsub.s32 %v112_v14, %v1118_v15  ;;  %v96_v26 = vld [vmem:[%s1190_s5 + $0x2] sm:$0x3]  ;;  %v785_v27 = vld [vmem:[%s1187_s2] ss:$0 sm:$0xff]  ;;  %vm199_vm5 = vcmask 17408   ;;  %s992_s2 = smov 126  }
  0x3c   :  { %v792_v33 = vld [vmem:[#allocation7] ss:$0 sm:$0xff]  ;;  %vm382_vm6 = vcmask 15360   ;;  %v97_v39 = vld [vmem:[%s1190_s5 + $0x4] sm:$0x3]  ;;  %s993_s15 = smov 124  }
  0x3d   :  { %82 = vadd.xlane.f32.xlu0 %v81_v8  ;;  %v994_v47 = vmov 2   ;;  %v995_v48 = vmov 1   ;;  %v996_v54 = vmov 0   ;;  %v799_v55 = vld [vmem:[%s1191_s6 + $0x1] ss:$0 sm:$0xff]  ;;  %s997_s19 = smov 4  }
  0x3e   :  { %866 = vset.pattern.permute.xlu1 %v994_v47  ;;  %865 = vset.pattern.permute.xlu0 %v995_v48  ;;  %v803_v59 = vld [vmem:[%s1191_s6 + $0x2] ss:$0 sm:$0xff] }
  0x41   :  { %87 = vadd.xlane.f32.xlu0 %v86_v9  ;;  %v788_v9 = vld [vmem:[%s1193_s8] ss:$0 sm:$0xff]  ;;  %s1000_s8 = smov [#allocation8]  }
  0x42   :  { %s772_s0 = sshll.u32 %s1000_s8, 4  ;;  %s773_s0 = int_to_ptr.vmem [resolvable:$true] %s772_s0 }
  0x43   :  { %s957_s12 = scalar_lea.vmem %s773_s0, 256  ;;  %p962_p11 = scmp.lt.s32.totalorder %s773_s0, %s773_s0 }
  0x44   :  { %p958_p10 = scmp.ne.s32.totalorder %s773_s0, %s957_s12  ;;  %p963_p12 = scmp.lt.s32.totalorder %s957_s12, %s957_s12 }
  0x46   :  { %p964_p13 = por %p963_p12, %p962_p11 }
  0x48   :  { %p965_p0 = pnand %p964_p13, %p958_p10 }
  0xca   :  { %v83_v16 = vpop.xlane.xlu0 %82 }
  0xcb   :  { %v89_v18 = vmul.f32 0.00390625, %v83_v16 }
  0xcd   :  { %v116_v21 = vrot.slane %v89_v18, %v115_v17 }
  0xce   :  { %v88_v19 = vpop.xlane.xlu0 %87 }
  0xcf   :  { %v90_v20 = vmul.f32 0.00390625, %v88_v19 }
  0xd1   :  { %v120_v22 = vrot.slane %v90_v20, %v115_v17 }
  0xd3   :  { %v122_v24 = vsel %vm121_vm2, %v120_v22, %v116_v21 }
  0xd4   :  { %822 = vmatmul.mubr.msk.f32.vlgmr.msra.gmra.mrb[0].mxu0 %vm123_vm3, %v122_v24  ;;  %827 = vmatmul.mubr.msk.f32.vlgmr.msra.gmra.mrb[0].mxu1 %vm123_vm3, %v122_v24 }
  0xd5   :  { %830 = vmatpush3.msk.msra.mxu0 %vm78_vm0, %v93_v23  ;;  %831 = vmatprep.mubr.msk.f32.mxu0 %vm991_vm1, %v990_v12 }
  0xd6   :  { %836 = vmatprep.mubr.msk.f32.mxu1 %vm991_vm1, %v990_v12  ;;  %839 = vmatprep.subr.mxu0 %v990_v12 }
  0xd7   :  { %835 = vmatpush3.msk.msra.mxu1 %vm386_vm4, %v95_v25 }
  0xd8   :  { %832 = vmatmul.mubr.msk.f32.vlgmr.msra.gmra.mrb[2].mxu0 %vm123_vm3, %v122_v24  ;;  %844 = vmatprep.subr.mxu1 %v990_v12 }
  0xd9   :  { %841 = vmatprep.mubr.msk.f32.mxu0 %vm991_vm1, %v990_v12  ;;  %840 = vmatpush3.msk.msra.mxu0 %vm386_vm4, %v96_v26 }
 0x1a7   :  { %v195_v28 = vpop.f32.mrb[0].mxu0  ;;  %v1139_v29 = vpop.f32.mrb[0].mxu1 }
 0x1a8   :  { %v196_v30 = vadd.f32 %v785_v27, %v195_v28  ;;  %v823_v31 = vpop.f32.mrb[1].mxu0  ;;  %v828_v32 = vpop.f32.mrb[1].mxu1  ;;  %v287_v10 = vadd.f32 %v788_v9, %v1139_v29 }
 0x1aa   :  { %v200_v34 = vsel %vm199_vm5, %v196_v30, -inf  ;;  %v791_v11 = vmul.f32 -1.442695, %v287_v10 }
 0x1ab   :  { %201 = vmax.xlane.f32.xlu0 %v200_v34  ;;  %v371_v35 = vpop.f32.mrb[2].mxu0 }
 0x1ac   :  { %v372_v36 = vadd.f32 %v792_v33, %v371_v35  ;;  %v833_v37 = vpop.f32.mrb[3].mxu0 }
 0x1ae   :  { %v375_v38 = vmax.f32 %v372_v36, 0.0 }
 0x1b0   :  { %483 = vrot.lane.b32.xlu1 %v375_v38, %s992_s2  ;;  %837 = vmatmul.mubr.msk.f32.vlgmr.msra.gmra.mrb[2].mxu1 %vm382_vm6, %v375_v38 }
 0x1b1   :  { %845 = vmatpush3.msk.msra.mxu1 %vm386_vm4, %v97_v39  ;;  %846 = vmatprep.mubr.msk.f32.mxu1 %vm991_vm1, %v990_v12  ;;  %v795_v12 = vld [vmem:[%s1191_s6] ss:$0 sm:$0xff]  ;;  %s998_s6 = smov 120   ;;  %v706_v39 = vsub.s32 1, %v1118_v15 }
 0x1b4   :  { %593 = vrot.lane.b32.xlu1 %v375_v38, %s993_s15 }
 0x222   :  { %v484_v40 = vpop.permute.xlu1 %483 }
 0x223   :  { %842 = vmatmul.mubr.msk.f32.vlgmr.msra.gmra.mrb[4].mxu0 %vm382_vm6, %v484_v40  ;;  %v699_v40 = vsub.s32 0, %v1118_v15 }
 0x226   :  { %v594_v41 = vpop.permute.xlu1 %593 }
 0x227   :  { %847 = vmatmul.mubr.msk.f32.vlgmr.msra.gmra.mrb[4].mxu1 %vm382_vm6, %v594_v41 }
 0x238   :  { %v202_v42 = vpop.xlane.xlu0 %201 }
 0x239   :  { %v203_v43 = vsub.f32 %v196_v30, %v202_v42 }
 0x23b   :  { %v204_v44 = vmul.f32 1.442695, %v203_v43 }
 0x23d   :  { %871 = vpow2.f32 %v204_v44 }
 0x247   :  { %v872_v45 = vpop.eup %871 }
 0x248   :  { %v206_v46 = vsel %vm199_vm5, %v872_v45, 0.0 }
 0x249   :  { %207 = vadd.xlane.f32.xlu1 %v206_v46 }
 0x283   :  { %v456_v49 = vpop.f32.mrb[2].mxu1 }
 0x284   :  { %v838_v50 = vpop.f32.mrb[3].mxu1  ;;  %v457_v13 = vadd.f32 %v795_v12, %v456_v49 }
 0x286   :  { %v798_v14 = vmul.f32 -1.442695, %v457_v13 }
 0x2d6   :  { %v208_v51 = vpop.xlane.xlu1 %207 }
 0x2d7   :  { %873 = vrcp.f32 %v208_v51  ;;  %v999_v51 = vmov 839922192  }
 0x2e1   :  { %v874_v52 = vpop.eup %873 }
 0x2e2   :  { %v210_v53 = vmul.f32 %v874_v52, %v872_v45  ;;  %v728_v52 = vunpack.c.l.s4 %v999_v51 }
 0x2e4   :  { %677 = vperm.xlu1 %866, %v210_v53   ;;  %567 = vperm.xlu0 %865, %v210_v53  }
 0x2e8   :  { %867 = vset.pattern.permute.xlu1 %v996_v54  ;;  %868 = vset.pattern.permute.xlu0 %v994_v47 }
 0x2e9   :  { %468 = vperm.xlu1 %867, %v210_v53   ;;  %v729_v53 = vunpack.c.0.s8 %v728_v52 }
 0x2eb   :  { %v732_v54 = vsub.s32 %v729_v53, %v1118_v15 }
 0x2f6   :  { %v556_v56 = vpop.f32.mrb[4].mxu0 }
 0x2f7   :  { %v557_v57 = vadd.f32 %v799_v55, %v556_v56  ;;  %v843_v58 = vpop.f32.mrb[5].mxu0 }
 0x2f9   :  { %v802_v60 = vmul.f32 -1.442695, %v557_v57 }
 0x2fa   :  { %v666_v61 = vpop.f32.mrb[4].mxu1 }
 0x2fb   :  { %875 = vpow2.f32 %v802_v60  ;;  %v667_v62 = vadd.f32 %v803_v59, %v666_v61  ;;  %v848_v63 = vpop.f32.mrb[5].mxu1 }
 0x2fd   :  { %v806_v2 = vmul.f32 -1.442695, %v667_v62 }
 0x2ff   :  { %877 = vpow2.f32 %v806_v2 }
 0x305   :  { %v876_v3 = vpop.eup %875 }
 0x306   :  { %v563_v4 = vadd.f32 1.0, %v876_v3 }
 0x308   :  { %879 = vrcp.f32 %v563_v4 }
 0x309   :  { %v878_v5 = vpop.eup %877 }
 0x30a   :  { %v673_v6 = vadd.f32 1.0, %v878_v5 }
 0x30c   :  { %881 = vrcp.f32 %v673_v6 }
 0x30d   :  { %883 = vpow2.f32 %v791_v11 }
 0x30e   :  { %885 = vpow2.f32 %v798_v14 }
 0x312   :  { %v880_v7 = vpop.eup %879 }
 0x313   :  { %578 = vrot.lane.b32.xlu0 %v880_v7, %s997_s19 }
 0x316   :  { %v882_v8 = vpop.eup %881 }
 0x317   :  { %688 = vrot.lane.b32.xlu0 %v882_v8, %s988_s10  ;;  %v884_v16 = vpop.eup %883 }
 0x318   :  { %v293_v17 = vadd.f32 1.0, %v884_v16  ;;  %v886_v18 = vpop.eup %885 }
 0x319   :  { %v463_v19 = vadd.f32 1.0, %v886_v18 }
 0x31a   :  { %887 = vrcp.f32 %v293_v17 }
 0x31b   :  { %889 = vrcp.f32 %v463_v19 }
 0x324   :  { %v888_v20 = vpop.eup %887 }
 0x325   :  { %v473_v24 = vsub.f32 1.0, %v888_v20  ;;  %v890_v28 = vpop.eup %889 }
 0x363   :  { %v678_v21 = vpop.permute.xlu1 %677  ;;  %v568_v22 = vpop.permute.xlu0 %567 }
 0x364   :  { %v570_v23 = vmul.f32 %v888_v20, %v568_v22  ;;  %v680_v25 = vmul.f32 %v888_v20, %v678_v21  ;;  %v576_v30 = vmul.f32 %v568_v22, %v473_v24  ;;  %v686_v33 = vmul.f32 %v678_v21, %v473_v24 }
 0x366   :  { %572 = vrot.lane.b32.xlu0 %v570_v23, %s993_s15 }
 0x368   :  { %v469_v26 = vpop.permute.xlu1 %468 }
 0x369   :  { %v474_v27 = vmul.f32 %v473_v24, %v469_v26  ;;  %v471_v37 = vmul.f32 %v888_v20, %v469_v26 }
 0x36a   :  { %682 = vrot.lane.b32.xlu0 %v680_v25, %s998_s6 }
 0x36b   :  { %v475_v29 = vmul.f32 %v890_v28, %v474_v27 }
 0x385   :  { %v579_v31 = vpop.permute.xlu0 %578 }
 0x386   :  { %v581_v32 = vmul.f32 %v579_v31, %v576_v30 }
 0x388   :  { %583 = vrot.lane.b32.xlu1 %v581_v32, %s993_s15 }
 0x389   :  { %v689_v34 = vpop.permute.xlu0 %688 }
 0x38a   :  { %v691_v35 = vmul.f32 %v689_v34, %v686_v33 }
 0x38c   :  { %693 = vrot.lane.b32.xlu1 %v691_v35, %s998_s6 }
 0x3d8   :  { %v573_v36 = vpop.permute.xlu0 %572 }
 0x3d9   :  { %v575_v38 = vadd.f32 %v573_v36, %v471_v37 }
 0x3dc   :  { %v683_v41 = vpop.permute.xlu0 %682 }
 0x3dd   :  { %v685_v42 = vadd.f32 %v683_v41, %v575_v38 }
 0x3df   :  { %v707_v43 = vrot.slane %v685_v42, %v706_v39  ;;  %v700_v44 = vrot.slane %v685_v42, %v699_v40 }
 0x3e1   :  { %709 = vbcast.lane.b32.xlu1 %v707_v43, 256  ;;  %702 = vbcast.lane.b32.xlu0 %v700_v44, 256 }
 0x3fa   :  { %v584_v45 = vpop.permute.xlu1 %583 }
 0x3fb   :  { %v586_v46 = vadd.f32 %v584_v45, %v475_v29 }
 0x3fe   :  { %v694_v47 = vpop.permute.xlu1 %693 }
 0x3ff   :  { %v696_v48 = vadd.f32 %v694_v47, %v586_v46 }
 0x401   :  { %v721_v49 = vrot.slane %v696_v48, %v706_v39  ;;  %v714_v50 = vrot.slane %v696_v48, %v699_v40 }
 0x403   :  { %723 = vbcast.lane.b32.xlu1 %v721_v49, 256  ;;  %716 = vbcast.lane.b32.xlu0 %v714_v50, 256 }
 0x453   :  { %v710_v55 = vpop.permute.xlu1 %709  ;;  %v703_v56 = vpop.permute.xlu0 %702 }
 0x454   :  { %v740_v57 = vrot.slane %v710_v55, %v732_v54  ;;  %v733_v58 = vrot.slane %v703_v56, %v732_v54 }
 0x456   :  { %v744_v61 = vmul.f32 %v740_v57, %v1099_v1  ;;  %v743_v62 = vmul.f32 %v733_v58, %v1097_v0 }
 0x475   :  { %v724_v59 = vpop.permute.xlu1 %723  ;;  %v717_v60 = vpop.permute.xlu0 %716 }
 0x476   :  { %v760_v63 = vrot.slane %v724_v59, %v732_v54  ;;  %v753_v2 = vrot.slane %v717_v60, %v732_v54 }
 0x478   :  { %v764_v3 = vadd.f32 %v760_v63, %v744_v61  ;;  %v763_v4 = vadd.f32 %v753_v2, %v743_v62 }
 0x47a   :  { %766 = vst [vmem:[#allocation8 + $0x8] sm:$0xff] %v764_v3  ;;  %765 = vst [vmem:[#allocation8] sm:$0xff] %v763_v4 }
 0x47b   :  { %968 = shalt.err (!%p965_p0)
}
 0x47c   :  { %s969_s25 = scalar_lea.hbm %s1194_s9, 256 }
 0x47d   :  { %p970_p1 = scmp.ne.s32.totalorder %s1194_s9, %s969_s25  ;;  %p973_p2 = scmp.lt.u32.totalorder %s969_s25, %s1194_s9 }
 0x47f   :  { %p975_p3 = pnand %p973_p2, %p970_p1 }
 0x481   :  { %978 = shalt.err (!%p975_p3)
}
 0x482   :  { %778 = dma.vmem_to_hbm [thread:$0]  %s773_s0, 256, %s1194_s9, [#allocation4], %s987_s1, %s987_s1, %s988_s10  }
 0x483   :  { %983 = dma.done.wait [#allocation4], 256  }
 0x484   :  { %984 = vsyncadd [#allocation4], 4294967040 }
 0x485   :  { %782 = vsyncpa [#allocation3], 1 }
 0x486   :  { %783 = vsyncpa [#allocation6], 1 }
 0x487   :  { %784 = vsyncpa [#allocation4], 1 }

// kernel: tpu_custom_call.1
= control target key start
LH: loop header
LB: loop body
LE: loop exit
PB: predicated region body
PF: predicated region fallthrough
CT: control target
= control target key end

     0   :  { %14 = vsyncpa [#allocation3], 0  ;;  %s1185_s0 = inlined_call_operand.hbm [shape: f32[2,4,256], index: 0, kind: input, shape index: {}]   ;;  %s1186_s1 = inlined_call_operand.hbm [shape: f32[4,3], index: 1, kind: input, shape index: {}]   ;;  %s1187_s2 = inlined_call_operand.vmem [shape: f32[1,3], index: 2, kind: input, shape index: {}]   ;;  %s1188_s3 = inlined_call_operand.vmem [shape: f32[4,6], index: 3, kind: input, shape index: {}]   ;;  %s1189_s4 = inlined_call_operand.hbm [shape: f32[1,6], index: 4, kind: input, shape index: {}]   ;;  %s1190_s5 = inlined_call_operand.vmem [shape: f32[3,2,4], index: 5, kind: input, shape index: {}]   ;;  %s1191_s6 = inlined_call_operand.vmem [shape: f32[3,1,4], index: 6, kind: input, shape index: {}]   ;;  %s1192_s7 = inlined_call_operand.vmem [shape: f32[4,12], index: 7, kind: input, shape index: {}]   ;;  %s1193_s8 = inlined_call_operand.vmem [shape: f32[1,12], index: 8, kind: input, shape index: {}]   ;;  %s1194_s9 = inlined_call_operand.hbm [shape: f32[2,4,256], index: 9, kind: output, shape index: {}]  }
   0x1   :  { %15 = vsyncpa [#allocation6], 0 }
   0x2   :  { %16 = vsyncpa [#allocation4], 0  ;;  %s985_s30 = smov [#allocation5]   ;;  %s986_s11 = smov [#allocation2]  }
   0x3   :  { %s35_s10 = sshll.u32 %s985_s30, 4  ;;  %s22_s12 = sshll.u32 %s986_s11, 4  ;;  %s36_s10 = int_to_ptr.vmem [resolvable:$true] %s35_s10  ;;  %s1051_s12 = int_to_ptr.vmem [resolvable:$true] %s22_s12 }
   0x4   :  { %s891_s15 = scalar_lea.hbm %s1186_s1, 64 }
   0x5   :  { %p892_p0 = scmp.ne.s32.totalorder %s1186_s1, %s891_s15  ;;  %p895_p1 = scmp.lt.u32.totalorder %s891_s15, %s1186_s1 }
   0x7   :  { %p897_p2 = pnand %p895_p1, %p892_p0 }
   0x9   :  { %900 = shalt.err (!%p897_p2)
}
   0xa   :  { %s901_s20 = scalar_lea.vmem %s36_s10, 64  ;;  %p906_p4 = scmp.lt.s32.totalorder %s36_s10, %s36_s10 }
   0xb   :  { %p902_p3 = scmp.ne.s32.totalorder %s36_s10, %s901_s20  ;;  %p907_p5 = scmp.lt.s32.totalorder %s901_s20, %s901_s20 }
   0xd   :  { %p908_p6 = por %p907_p5, %p906_p4 }
   0xf   :  { %p909_p7 = pnand %p908_p6, %p902_p3 }
  0x11   :  { %912 = shalt.err (!%p909_p7)
}
  0x12   :  { %38 = dma.hbm_to_vmem [thread:$0]  %s1186_s1, 64, %s36_s10, [#allocation6]  }
  0x13   :  { %s913_s25 = scalar_lea.hbm %s1185_s0, 256 }
  0x14   :  { %p914_p8 = scmp.ne.s32.totalorder %s1185_s0, %s913_s25  ;;  %p917_p9 = scmp.lt.u32.totalorder %s913_s25, %s1185_s0 }
  0x16   :  { %p919_p10 = pnand %p917_p9, %p914_p8 }
  0x18   :  { %922 = shalt.err (!%p919_p10)
}
  0x19   :  { %s923_s30 = scalar_lea.vmem %s1051_s12, 256  ;;  %p928_p12 = scmp.lt.s32.totalorder %s1051_s12, %s1051_s12 }
  0x1a   :  { %p924_p11 = scmp.ne.s32.totalorder %s1051_s12, %s923_s30  ;;  %p929_p13 = scmp.lt.s32.totalorder %s923_s30, %s923_s30 }
  0x1c   :  { %p930_p0 = por %p929_p13, %p928_p12 }
  0x1e   :  { %p931_p1 = pnand %p930_p0, %p924_p11 }
  0x20   :  { %934 = shalt.err (!%p931_p1)
}
  0x21   :  { %s987_s1 = smov 128   ;;  %s988_s10 = smov 8  }
  0x22   :  { %28 = dma.hbm_to_vmem [thread:$0]  %s1185_s0, 256, %s1051_s12, [#allocation3], %s987_s1, %s987_s1, %s988_s10  }
  0x23   :  { %s989_s14 = smov [#allocation7]   ;;  %s935_s18 = scalar_lea.hbm %s1189_s4, 16 }
  0x24   :  { %s49_s15 = sshll.u32 %s989_s14, 4  ;;  %p936_p2 = scmp.ne.s32.totalorder %s1189_s4, %s935_s18  ;;  %s50_s15 = int_to_ptr.vmem [resolvable:$true] %s49_s15 }
  0x25   :  { %p939_p3 = scmp.lt.u32.totalorder %s935_s18, %s1189_s4 }
  0x27   :  { %p941_p4 = pnand %p939_p3, %p936_p2 }
  0x29   :  { %944 = shalt.err (!%p941_p4)
}
  0x2a   :  { %s945_s23 = scalar_lea.vmem %s50_s15, 16  ;;  %s949_s0 = scalar_lea.vmem %s50_s15, 32 }
  0x2b   :  { %p946_p5 = scmp.ne.s32.totalorder %s50_s15, %s945_s23  ;;  %p950_p6 = scmp.lt.s32.totalorder %s50_s15, %s50_s15 }
  0x2c   :  { %p951_p7 = scmp.lt.s32.totalorder %s949_s0, %s945_s23 }
  0x2e   :  { %p952_p8 = por %p951_p7, %p950_p6 }
  0x30   :  { %p953_p9 = pnand %p952_p8, %p946_p5 }
  0x32   :  { %956 = shalt.err (!%p953_p9)
}
  0x33   :  { %52 = dma.hbm_to_vmem [thread:$0]  %s1189_s4, 16, %s50_s15, [#allocation6]  }
  0x34   :  { %979 = dma.done.wait [#allocation3], 256  }
  0x35   :  { %980 = vsyncadd [#allocation3], 4294967040 }
  0x36   :  { %981 = dma.done.wait [#allocation6], 80  }
  0x37   :  { %982 = vsyncadd [#allocation6], 4294967216  ;;  %vm78_vm0 = vcmask 1043456   ;;  %v1097_v0 = vld [vmem:[#allocation2] sm:$0xff]  ;;  %v1099_v1 = vld [vmem:[#allocation2 + $0x8] sm:$0xff]  ;;  %v990_v12 = vmov 0.0   ;;  %v111_v13 = vlaneseq }
  0x38   :  { %v74_v2 = vcombine.high %v1097_v0, %v1097_v0  ;;  %v79_v3 = vsel %vm78_vm0, %v1097_v0, 0.0  ;;  %v75_v4 = vcombine.high %v1099_v1, %v1099_v1  ;;  %v84_v6 = vsel %vm78_vm0, %v1099_v1, 0.0  ;;  %v91_v10 = vld [vmem:[#allocation5] sm:$0xf]  ;;  %v101_v11 = vld [vmem:[%s1192_s7] sm:$0xf]  ;;  %819 = vmatprep.subr.mxu0 %v990_v12  ;;  %824 = vmatprep.subr.mxu1 %v990_v12 }
  0x39   :  { %820 = vmatpush3.msk.msra.mxu0 %vm78_vm0, %v91_v10  ;;  %vm991_vm1 = vmmov 0   ;;  %825 = vmatpush3.msk.msra.mxu1 %vm78_vm0, %v101_v11  ;;  %v112_v14 = vand.u32 127, %v111_v13  ;;  %v1118_v15 = vshrl.u32 %v111_v13, 7  ;;  %vm121_vm2 = vcmask 1041409   ;;  %v93_v23 = vld [vmem:[%s1188_s3] sm:$0xf] }
  0x3a   :  { %v80_v5 = vsel %vm78_vm0, %v74_v2, 0.0  ;;  %v85_v7 = vsel %vm78_vm0, %v75_v4, 0.0  ;;  %821 = vmatprep.mubr.msk.f32.mxu0 %vm991_vm1, %v990_v12  ;;  %826 = vmatprep.mubr.msk.f32.mxu1 %vm991_vm1, %v990_v12  ;;  %vm123_vm3 = vcmask 31744   ;;  %v95_v25 = vld [vmem:[%s1190_s5] sm:$0x3]  ;;  %vm386_vm4 = vcmask 1041408  }
  0x3b   :  { %v81_v8 = vadd.f32 %v80_v5, %v79_v3  ;;  %v86_v9 = vadd.f32 %v85_v7, %v84_v6  ;;  %829 = vmatprep.subr.mxu0 %v990_v12  ;;  %834 = vmatprep.subr.mxu1 %v990_v12  ;;  %v115_v17 = vsub.s32 %v112_v14, %v1118_v15  ;;  %v96_v26 = vld [vmem:[%s1190_s5 + $0x2] sm:$0x3]  ;;  %v785_v27 = vld [vmem:[%s1187_s2] ss:$0 sm:$0xff]  ;;  %vm199_vm5 = vcmask 17408   ;;  %s992_s2 = smov 126  }
  0x3c   :  { %v792_v33 = vld [vmem:[#allocation7] ss:$0 sm:$0xff]  ;;  %vm382_vm6 = vcmask 15360   ;;  %v97_v39 = vld [vmem:[%s1190_s5 + $0x4] sm:$0x3]  ;;  %s993_s15 = smov 124  }
  0x3d   :  { %82 = vadd.xlane.f32.xlu0 %v81_v8  ;;  %v994_v47 = vmov 2   ;;  %v995_v48 = vmov 1   ;;  %v996_v54 = vmov 0   ;;  %v799_v55 = vld [vmem:[%s1191_s6 + $0x1] ss:$0 sm:$0xff]  ;;  %s997_s19 = smov 4  }
  0x3e   :  { %866 = vset.pattern.permute.xlu1 %v994_v47  ;;  %865 = vset.pattern.permute.xlu0 %v995_v48  ;;  %v803_v59 = vld [vmem:[%s1191_s6 + $0x2] ss:$0 sm:$0xff] }
  0x41   :  { %87 = vadd.xlane.f32.xlu0 %v86_v9  ;;  %v788_v9 = vld [vmem:[%s1193_s8] ss:$0 sm:$0xff]  ;;  %s1000_s8 = smov [#allocation8]  }
  0x42   :  { %s772_s0 = sshll.u32 %s1000_s8, 4  ;;  %s773_s0 = int_to_ptr.vmem [resolvable:$true] %s772_s0 }
  0x43   :  { %s957_s12 = scalar_lea.vmem %s773_s0, 256  ;;  %p962_p11 = scmp.lt.s32.totalorder %s773_s0, %s773_s0 }
  0x44   :  { %p958_p10 = scmp.ne.s32.totalorder %s773_s0, %s957_s12  ;;  %p963_p12 = scmp.lt.s32.totalorder %s957_s12, %s957_s12 }
  0x46   :  { %p964_p13 = por %p963_p12, %p962_p11 }
  0x48   :  { %p965_p0 = pnand %p964_p13, %p958_p10 }
  0xca   :  { %v83_v16 = vpop.xlane.xlu0 %82 }
  0xcb   :  { %v89_v18 = vmul.f32 0.00390625, %v83_v16 }
  0xcd   :  { %v116_v21 = vrot.slane %v89_v18, %v115_v17 }
  0xce   :  { %v88_v19 = vpop.xlane.xlu0 %87 }
  0xcf   :  { %v90_v20 = vmul.f32 0.00390625, %v88_v19 }
  0xd1   :  { %v120_v22 = vrot.slane %v90_v20, %v115_v17 }
  0xd3   :  { %v122_v24 = vsel %vm121_vm2, %v120_v22, %v116_v21 }
  0xd4   :  { %822 = vmatmul.mubr.msk.f32.vlgmr.msra.gmra.mrb[0].mxu0 %vm123_vm3, %v122_v24  ;;  %827 = vmatmul.mubr.msk.f32.vlgmr.msra.gmra.mrb[0].mxu1 %vm123_vm3, %v122_v24 }
  0xd5   :  { %830 = vmatpush3.msk.msra.mxu0 %vm78_vm0, %v93_v23  ;;  %831 = vmatprep.mubr.msk.f32.mxu0 %vm991_vm1, %v990_v12 }
  0xd6   :  { %836 = vmatprep.mubr.msk.f32.mxu1 %vm991_vm1, %v990_v12  ;;  %839 = vmatprep.subr.mxu0 %v990_v12 }
  0xd7   :  { %835 = vmatpush3.msk.msra.mxu1 %vm386_vm4, %v95_v25 }
  0xd8   :  { %832 = vmatmul.mubr.msk.f32.vlgmr.msra.gmra.mrb[2].mxu0 %vm123_vm3, %v122_v24  ;;  %844 = vmatprep.subr.mxu1 %v990_v12 }
  0xd9   :  { %841 = vmatprep.mubr.msk.f32.mxu0 %vm991_vm1, %v990_v12  ;;  %840 = vmatpush3.msk.msra.mxu0 %vm386_vm4, %v96_v26 }
 0x1a7   :  { %v195_v28 = vpop.f32.mrb[0].mxu0  ;;  %v1139_v29 = vpop.f32.mrb[0].mxu1 }
 0x1a8   :  { %v196_v30 = vadd.f32 %v785_v27, %v195_v28  ;;  %v823_v31 = vpop.f32.mrb[1].mxu0  ;;  %v828_v32 = vpop.f32.mrb[1].mxu1  ;;  %v287_v10 = vadd.f32 %v788_v9, %v1139_v29 }
 0x1aa   :  { %v200_v34 = vsel %vm199_vm5, %v196_v30, -inf  ;;  %v791_v11 = vmul.f32 -1.442695, %v287_v10 }
 0x1ab   :  { %201 = vmax.xlane.f32.xlu0 %v200_v34  ;;  %v371_v35 = vpop.f32.mrb[2].mxu0 }
 0x1ac   :  { %v372_v36 = vadd.f32 %v792_v33, %v371_v35  ;;  %v833_v37 = vpop.f32.mrb[3].mxu0 }
 0x1ae   :  { %v375_v38 = vmax.f32 %v372_v36, 0.0 }
 0x1b0   :  { %483 = vrot.lane.b32.xlu1 %v375_v38, %s992_s2  ;;  %837 = vmatmul.mubr.msk.f32.vlgmr.msra.gmra.mrb[2].mxu1 %vm382_vm6, %v375_v38 }
 0x1b1   :  { %845 = vmatpush3.msk.msra.mxu1 %vm386_vm4, %v97_v39  ;;  %846 = vmatprep.mubr.msk.f32.mxu1 %vm991_vm1, %v990_v12  ;;  %v795_v12 = vld [vmem:[%s1191_s6] ss:$0 sm:$0xff]  ;;  %s998_s6 = smov 120   ;;  %v706_v39 = vsub.s32 1, %v1118_v15 }
 0x1b4   :  { %593 = vrot.lane.b32.xlu1 %v375_v38, %s993_s15 }
 0x222   :  { %v484_v40 = vpop.permute.xlu1 %483 }
 0x223   :  { %842 = vmatmul.mubr.msk.f32.vlgmr.msra.gmra.mrb[4].mxu0 %vm382_vm6, %v484_v40  ;;  %v699_v40 = vsub.s32 0, %v1118_v15 }
 0x226   :  { %v594_v41 = vpop.permute.xlu1 %593 }
 0x227   :  { %847 = vmatmul.mubr.msk.f32.vlgmr.msra.gmra.mrb[4].mxu1 %vm382_vm6, %v594_v41 }
 0x238   :  { %v202_v42 = vpop.xlane.xlu0 %201 }
 0x239   :  { %v203_v43 = vsub.f32 %v196_v30, %v202_v42 }
 0x23b   :  { %v204_v44 = vmul.f32 1.442695, %v203_v43 }
 0x23d   :  { %871 = vpow2.f32 %v204_v44 }
 0x247   :  { %v872_v45 = vpop.eup %871 }
 0x248   :  { %v206_v46 = vsel %vm199_vm5, %v872_v45, 0.0 }
 0x249   :  { %207 = vadd.xlane.f32.xlu1 %v206_v46 }
 0x283   :  { %v456_v49 = vpop.f32.mrb[2].mxu1 }
 0x284   :  { %v838_v50 = vpop.f32.mrb[3].mxu1  ;;  %v457_v13 = vadd.f32 %v795_v12, %v456_v49 }
 0x286   :  { %v798_v14 = vmul.f32 -1.442695, %v457_v13 }
 0x2d6   :  { %v208_v51 = vpop.xlane.xlu1 %207 }
 0x2d7   :  { %873 = vrcp.f32 %v208_v51  ;;  %v999_v51 = vmov 839922192  }
 0x2e1   :  { %v874_v52 = vpop.eup %873 }
 0x2e2   :  { %v210_v53 = vmul.f32 %v874_v52, %v872_v45  ;;  %v728_v52 = vunpack.c.l.s4 %v999_v51 }
 0x2e4   :  { %677 = vperm.xlu1 %866, %v210_v53   ;;  %567 = vperm.xlu0 %865, %v210_v53  }
 0x2e8   :  { %867 = vset.pattern.permute.xlu1 %v996_v54  ;;  %868 = vset.pattern.permute.xlu0 %v994_v47 }
 0x2e9   :  { %468 = vperm.xlu1 %867, %v210_v53   ;;  %v729_v53 = vunpack.c.0.s8 %v728_v52 }
 0x2eb   :  { %v732_v54 = vsub.s32 %v729_v53, %v1118_v15 }
 0x2f6   :  { %v556_v56 = vpop.f32.mrb[4].mxu0 }
 0x2f7   :  { %v557_v57 = vadd.f32 %v799_v55, %v556_v56  ;;  %v843_v58 = vpop.f32.mrb[5].mxu0 }
 0x2f9   :  { %v802_v60 = vmul.f32 -1.442695, %v557_v57 }
 0x2fa   :  { %v666_v61 = vpop.f32.mrb[4].mxu1 }
 0x2fb   :  { %875 = vpow2.f32 %v802_v60  ;;  %v667_v62 = vadd.f32 %v803_v59, %v666_v61  ;;  %v848_v63 = vpop.f32.mrb[5].mxu1 }
 0x2fd   :  { %v806_v2 = vmul.f32 -1.442695, %v667_v62 }
 0x2ff   :  { %877 = vpow2.f32 %v806_v2 }
 0x305   :  { %v876_v3 = vpop.eup %875 }
 0x306   :  { %v563_v4 = vadd.f32 1.0, %v876_v3 }
 0x308   :  { %879 = vrcp.f32 %v563_v4 }
 0x309   :  { %v878_v5 = vpop.eup %877 }
 0x30a   :  { %v673_v6 = vadd.f32 1.0, %v878_v5 }
 0x30c   :  { %881 = vrcp.f32 %v673_v6 }
 0x30d   :  { %883 = vpow2.f32 %v791_v11 }
 0x30e   :  { %885 = vpow2.f32 %v798_v14 }
 0x312   :  { %v880_v7 = vpop.eup %879 }
 0x313   :  { %578 = vrot.lane.b32.xlu0 %v880_v7, %s997_s19 }
 0x316   :  { %v882_v8 = vpop.eup %881 }
 0x317   :  { %688 = vrot.lane.b32.xlu0 %v882_v8, %s988_s10  ;;  %v884_v16 = vpop.eup %883 }
 0x318   :  { %v293_v17 = vadd.f32 1.0, %v884_v16  ;;  %v886_v18 = vpop.eup %885 }
 0x319   :  { %v463_v19 = vadd.f32 1.0, %v886_v18 }
 0x31a   :  { %887 = vrcp.f32 %v293_v17 }
 0x31b   :  { %889 = vrcp.f32 %v463_v19 }
 0x324   :  { %v888_v20 = vpop.eup %887 }
 0x325   :  { %v473_v24 = vsub.f32 1.0, %v888_v20  ;;  %v890_v28 = vpop.eup %889 }
 0x363   :  { %v678_v21 = vpop.permute.xlu1 %677  ;;  %v568_v22 = vpop.permute.xlu0 %567 }
 0x364   :  { %v570_v23 = vmul.f32 %v888_v20, %v568_v22  ;;  %v680_v25 = vmul.f32 %v888_v20, %v678_v21  ;;  %v576_v30 = vmul.f32 %v568_v22, %v473_v24  ;;  %v686_v33 = vmul.f32 %v678_v21, %v473_v24 }
 0x366   :  { %572 = vrot.lane.b32.xlu0 %v570_v23, %s993_s15 }
 0x368   :  { %v469_v26 = vpop.permute.xlu1 %468 }
 0x369   :  { %v474_v27 = vmul.f32 %v473_v24, %v469_v26  ;;  %v471_v37 = vmul.f32 %v888_v20, %v469_v26 }
 0x36a   :  { %682 = vrot.lane.b32.xlu0 %v680_v25, %s998_s6 }
 0x36b   :  { %v475_v29 = vmul.f32 %v890_v28, %v474_v27 }
 0x385   :  { %v579_v31 = vpop.permute.xlu0 %578 }
 0x386   :  { %v581_v32 = vmul.f32 %v579_v31, %v576_v30 }
 0x388   :  { %583 = vrot.lane.b32.xlu1 %v581_v32, %s993_s15 }
 0x389   :  { %v689_v34 = vpop.permute.xlu0 %688 }
 0x38a   :  { %v691_v35 = vmul.f32 %v689_v34, %v686_v33 }
 0x38c   :  { %693 = vrot.lane.b32.xlu1 %v691_v35, %s998_s6 }
 0x3d8   :  { %v573_v36 = vpop.permute.xlu0 %572 }
 0x3d9   :  { %v575_v38 = vadd.f32 %v573_v36, %v471_v37 }
 0x3dc   :  { %v683_v41 = vpop.permute.xlu0 %682 }
 0x3dd   :  { %v685_v42 = vadd.f32 %v683_v41, %v575_v38 }
 0x3df   :  { %v707_v43 = vrot.slane %v685_v42, %v706_v39  ;;  %v700_v44 = vrot.slane %v685_v42, %v699_v40 }
 0x3e1   :  { %709 = vbcast.lane.b32.xlu1 %v707_v43, 256  ;;  %702 = vbcast.lane.b32.xlu0 %v700_v44, 256 }
 0x3fa   :  { %v584_v45 = vpop.permute.xlu1 %583 }
 0x3fb   :  { %v586_v46 = vadd.f32 %v584_v45, %v475_v29 }
 0x3fe   :  { %v694_v47 = vpop.permute.xlu1 %693 }
 0x3ff   :  { %v696_v48 = vadd.f32 %v694_v47, %v586_v46 }
 0x401   :  { %v721_v49 = vrot.slane %v696_v48, %v706_v39  ;;  %v714_v50 = vrot.slane %v696_v48, %v699_v40 }
 0x403   :  { %723 = vbcast.lane.b32.xlu1 %v721_v49, 256  ;;  %716 = vbcast.lane.b32.xlu0 %v714_v50, 256 }
 0x453   :  { %v710_v55 = vpop.permute.xlu1 %709  ;;  %v703_v56 = vpop.permute.xlu0 %702 }
 0x454   :  { %v740_v57 = vrot.slane %v710_v55, %v732_v54  ;;  %v733_v58 = vrot.slane %v703_v56, %v732_v54 }
 0x456   :  { %v744_v61 = vmul.f32 %v740_v57, %v1099_v1  ;;  %v743_v62 = vmul.f32 %v733_v58, %v1097_v0 }
 0x475   :  { %v724_v59 = vpop.permute.xlu1 %723  ;;  %v717_v60 = vpop.permute.xlu0 %716 }
 0x476   :  { %v760_v63 = vrot.slane %v724_v59, %v732_v54  ;;  %v753_v2 = vrot.slane %v717_v60, %v732_v54 }
 0x478   :  { %v764_v3 = vadd.f32 %v760_v63, %v744_v61  ;;  %v763_v4 = vadd.f32 %v753_v2, %v743_v62 }
 0x47a   :  { %766 = vst [vmem:[#allocation8 + $0x8] sm:$0xff] %v764_v3  ;;  %765 = vst [vmem:[#allocation8] sm:$0xff] %v763_v4 }
 0x47b   :  { %968 = shalt.err (!%p965_p0)
}
 0x47c   :  { %s969_s25 = scalar_lea.hbm %s1194_s9, 256 }
 0x47d   :  { %p970_p1 = scmp.ne.s32.totalorder %s1194_s9, %s969_s25  ;;  %p973_p2 = scmp.lt.u32.totalorder %s969_s25, %s1194_s9 }
 0x47f   :  { %p975_p3 = pnand %p973_p2, %p970_p1 }
 0x481   :  { %978 = shalt.err (!%p975_p3)
}
 0x482   :  { %778 = dma.vmem_to_hbm [thread:$0]  %s773_s0, 256, %s1194_s9, [#allocation4], %s987_s1, %s987_s1, %s988_s10  }
 0x483   :  { %983 = dma.done.wait [#allocation4], 256  }
 0x484   :  { %984 = vsyncadd [#allocation4], 4294967040 }
 0x485   :  { %782 = vsyncpa [#allocation3], 1 }
 0x486   :  { %783 = vsyncpa [#allocation6], 1 }
 0x487   :  { %784 = vsyncpa [#allocation4], 1 }

</bundles_post_ra>
